<compile_context>
chip_gen: v7x
topology: tpu7x:2x2x1
jax: 0.10.0
libtpu: 0.0.40
codegen_flags: <defaults>
</compile_context>

<pallas_src>
import math
import numpy as np
import jax
import jax.numpy as jnp
from jax.experimental import pallas as pl
from jax.experimental.pallas import tpu as pltpu

LOG2PI = float(np.log(2.0 * np.pi))
GAUSSIAN_SCALER = float(1.0 / np.sqrt(2.0 * np.pi))
LANES = 128


# --------------------------- layout / packing (init-time, NOT per-call) ----------------

def make_layout(dims):
    """dims: [(n_in, n_out)] per layer.  Weights stored pre-transposed (n_in, n_out) in a
    per-layer row band at lane offset 0, zero-padded to 128 lanes; biases in trailing rows."""
    assert all(n_out <= LANES for _, n_out in dims)
    w_rows, row = [], 0
    for n_in, _ in dims:
        w_rows.append(row)
        row += -(-n_in // 8) * 8                    # keep every band sublane(x8)-aligned
    b_rows = [row + i for i in range(len(dims))]
    row += len(dims)
    n_rows = -(-row // 8) * 8
    n_valid = sum(n_in * n_out + n_out for n_in, n_out in dims)
    return dict(dims=tuple(dims), w_rows=tuple(w_rows), b_rows=tuple(b_rows),
                n_rows=n_rows, n_valid=n_valid)


def pack_mu_rho(layer_params, layout):
    """One-time host-side (numpy) packing of learned params into the (2, R, 128) slab."""
    R = layout["n_rows"]
    slab = np.zeros((2, R, LANES), np.float32)
    for p, r0, br, (n_in, n_out) in zip(layer_params, layout["w_rows"],
                                        layout["b_rows"], layout["dims"]):
        slab[0, r0:r0 + n_in, :n_out] = np.asarray(p["wmu"]).T
        slab[1, r0:r0 + n_in, :n_out] = np.asarray(p["wrho"]).T
        slab[0, br, :n_out] = np.asarray(p["bmu"]).reshape(-1)
        slab[1, br, :n_out] = np.asarray(p["brho"]).reshape(-1)
    return jnp.asarray(slab)


def pack_eps(eps_layers, layout):
    """Pack one MC sample's eps tensors into an (R, 128) slab (pad slots stay exactly 0)."""
    R = layout["n_rows"]
    slab = np.zeros((R, LANES), np.float32)
    for e, r0, br, (n_in, n_out) in zip(eps_layers, layout["w_rows"],
                                        layout["b_rows"], layout["dims"]):
        slab[r0:r0 + n_in, :n_out] = np.asarray(e["eps_w"]).T
        slab[br, :n_out] = np.asarray(e["eps_b"]).reshape(-1)
    return jnp.asarray(slab)


# --------------------------------- Pallas kernel ---------------------------------------

def make_bnn_kernel(layout, n_samples, n_classes, pi, s1, s2, mixture):
    dims, w_rows, b_rows = layout["dims"], layout["w_rows"], layout["b_rows"]
    n_valid = layout["n_valid"]
    n_layers = len(dims)
    pi, s1, s2 = float(pi), float(s1), float(s2)

    # NOTE: the torch module calls mixture_prior(W, pi, s2, s1) (swapped sigmas), i.e.
    #   prior = pi * N(0, s2) + (1 - pi) * N(0, s1)   -- reproduced exactly here.
    use_mixture = bool(mixture) and 0.0 < pi < 1.0   # degenerate pi -> single gaussian
    if mixture and not use_mixture:
        sg = s1 if pi <= 0.0 else s2
    else:
        sg = s1

    if use_mixture:
        c1, c2 = GAUSSIAN_SCALER / s1, GAUSSIAN_SCALER / s2
        a1, a2 = 1.0 / (2.0 * s1 * s1), 1.0 / (2.0 * s2 * s2)
        # factored, underflow-safe:  log(k_min + k_max*exp(-d_a*v2)) - a_min*v2
        if a1 <= a2:
            a_min, k_min, k_max, d_a = a1, (1.0 - pi) * c1, pi * c2, a2 - a1
        else:
            a_min, k_min, k_max, d_a = a2, pi * c2, (1.0 - pi) * c1, a1 - a2
        ksum = k_min + k_max
        k_min_n = k_min / ksum
        k_max_n = 1.0 - k_min_n              # pads (v2=0): log(k_min_n + k_max_n) == 0
        lpw_const = n_valid * math.log(ksum)
    else:
        lg_const = -0.5 * LOG2PI - math.log(abs(sg))
        inv_2ssq = 1.0 / (2.0 * sg * sg)
        lpw_const = n_valid * lg_const

    lqw_const = n_valid * (-0.5 * LOG2PI)

    def kernel(x_ref, mr_ref, eps_ref, out_ref, lpw_ref, lqw_ref):
        mu = mr_ref[0]                               # (R, 128)
        rho = mr_ref[1]

        # ---- sample-independent factors (hoisted out of the MC-sample loop) ----
        e_rho = jnp.exp(rho)                         # EUP
        # softplus, same formula as reference (unstable only if rho grows large positive)
        sp = jnp.log(1.0 + e_rho)
        inv_sig = pl.reciprocal(e_rho, approx=True)  # 1/exp(rho) without a second exp
        inv_sig = inv_sig * (2.0 - e_rho * inv_sig)  # one Newton step -> ~f32 exact
        sum_rho = jnp.sum(rho)                       # pad slots are 0 -> contribute nothing
        x = x_ref[...]                               # (B, n_input)

        for s in range(n_samples):                   # static unroll: one call, S samples
            eps = eps_ref[s]                         # (R, 128)
            delta = sp * eps                         # == W - mu ; 0 on pads
            w_all = mu + delta                       # sampled weights/biases, pads stay 0

            # ---- lqw = sum log q(w | mu, rho) ; pads contribute exactly 0 ----
            t = delta * inv_sig
            lqw_ref[s] = lqw_const - sum_rho - 0.5 * jnp.sum(t * t)

            # ---- lpw = sum log p(w) ; pads contribute exactly 0 ----
            v2 = w_all * w_all
            if use_mixture:
                lpw_core = jnp.log(k_min_n + k_max_n * jnp.exp(-d_a * v2)) - a_min * v2
            else:
                lpw_core = -v2 * inv_2ssq
            lpw_ref[s] = jnp.sum(lpw_core) + lpw_const

            # ---- MLP: linear -> relu -> linear -> relu -> linear -> softmax ----
            h = x
            for li in range(n_layers):
                n_in, _ = dims[li]
                r0, br = w_rows[li], b_rows[li]
                w = w_all[r0:r0 + n_in, :]           # (n_in, 128), lane offset 0
                b = w_all[br:br + 1, :]              # (1, 128)
                y = jnp.dot(h, w, preferred_element_type=jnp.float32) + b
                if li < n_layers - 1:
                    # keep only the valid lanes of the activation (offset-0 slice)
                    h = jnp.maximum(y, 0.0)[:, :dims[li + 1][0]]
                else:
                    # masked softmax over the first n_classes lanes (pad lanes excluded)
                    col = jax.lax.broadcasted_iota(jnp.int32, y.shape, 1)
                    ym = jnp.where(col < n_classes, y, -1e30)
                    m = jnp.max(ym, axis=1, keepdims=True)
                    e = jnp.exp(ym - m)              # pad lanes underflow to exactly 0
                    den = jnp.sum(e, axis=1, keepdims=True)
                    r = pl.reciprocal(den, approx=True)
                    r = r * (2.0 - den * r)          # one Newton step
                    out_ref[s] = e * r               # lane-dense (B, 128) store

    return kernel


def build_bnn_forward(layout, *, batch, n_classes, n_samples, pi, s1, s2, mixture):
    R = layout["n_rows"]
    kernel = make_bnn_kernel(layout, n_samples, n_classes, pi, s1, s2, mixture)
    vmem = pl.BlockSpec(memory_space=pltpu.MemorySpace.VMEM)
    smem = pl.BlockSpec(memory_space=pltpu.MemorySpace.SMEM)

    call = pl.pallas_call(
        kernel,
        out_shape=(
            jax.ShapeDtypeStruct((n_samples, batch, LANES), jnp.float32),  # padded probs
            jax.ShapeDtypeStruct((n_samples,), jnp.float32),               # lpw per sample
            jax.ShapeDtypeStruct((n_samples,), jnp.float32),               # lqw per sample
        ),
        in_specs=[vmem, vmem, vmem],
        out_specs=(vmem, smem, smem),
    )

    @jax.jit
    def forward(x2d, mu_rho_pack, eps_pack):
        out_pad, lpw, lqw = call(x2d, mu_rho_pack, eps_pack)
        return out_pad[:, :, :n_classes], lpw, lqw

    return forward


# ------------------------------- plain-JAX reference ------------------------------------

def bnn_forward_ref(x2d, layer_params, *, pi, s1, s2, mixture):
    h = x2d
    lpw = 0.0
    lqw = 0.0
    n_layers = len(layer_params)
    for li, p in enumerate(layer_params):
        W = p["wmu"] + jnp.log(1.0 + jnp.exp(p["wrho"])) * p["eps_w"]
        b = p["bmu"] + jnp.log(1.0 + jnp.exp(p["brho"])) * p["eps_b"]
        y = h @ W.T + b
        lqw += jnp.sum(-0.5 * LOG2PI - p["wrho"]
                       - (W - p["wmu"]) ** 2 / (2.0 * jnp.exp(p["wrho"]) ** 2))
        lqw += jnp.sum(-0.5 * LOG2PI - p["brho"]
                       - (b - p["bmu"]) ** 2 / (2.0 * jnp.exp(p["brho"]) ** 2))
        if mixture:
            def mix_logprob(v):
                g_narrow = GAUSSIAN_SCALER / s2 * jnp.exp(-(v ** 2) / (2.0 * s2 ** 2))
                g_wide = GAUSSIAN_SCALER / s1 * jnp.exp(-(v ** 2) / (2.0 * s1 ** 2))
                return jnp.log(pi * g_narrow + (1.0 - pi) * g_wide)
            lpw += jnp.sum(mix_logprob(W)) + jnp.sum(mix_logprob(b))
        else:
            lpw += jnp.sum((-0.5 * LOG2PI - math.log(abs(s1))) - W ** 2 / (2.0 * s1 ** 2))
            lpw += jnp.sum((-0.5 * LOG2PI - math.log(abs(s1))) - b ** 2 / (2.0 * s1 ** 2))
        if li < n_layers - 1:
            h = jax.nn.relu(y)
        else:
            h = jax.nn.softmax(y, axis=1)
    return h, lpw, lqw


# --------------------------------- parameter init ---------------------------------------

def init_layer(key, n_in, n_out, rho_init):
    k1, k2, k3, k4 = jax.random.split(key, 4)
    # kaiming_uniform_(nonlinearity='relu'): bound = sqrt(2) * sqrt(3 / fan_in)
    w_bound = math.sqrt(2.0) * math.sqrt(3.0 / n_in)
    wmu = jax.random.uniform(k1, (n_out, n_in), jnp.float32, -w_bound, w_bound)
    b_bound = 1.0 / math.sqrt(n_in)
    bmu = jax.random.uniform(k2, (1, n_out), jnp.float32, -b_bound, b_bound)
    wrho = rho_init + 0.05 * jax.random.normal(k3, (n_out, n_in), jnp.float32)
    brho = rho_init + 0.05 * jax.random.normal(k4, (1, n_out), jnp.float32)
    return dict(wmu=wmu, wrho=wrho, bmu=bmu, brho=brho)


# --------------------------------------- main -------------------------------------------

if __name__ == "__main__":
    # hyperparameters (the torch module reads these off a `hyperparameters` object)
    n_input, hidden_units, n_output = 16, 32, 8
    pi, s1, s2, rho_init, mixture = 0.5, 1.0, 0.25, -4.0, True
    n_samples = 4                                   # MC weight samples fused into one call

    key = jax.random.PRNGKey(0)
    kx, kp, ke = jax.random.split(key, 3)

    # raw input, then data.view(-1, n_input) as in BNN.forward
    x = jax.random.normal(kx, (2, 4, 16), jnp.float32)
    x2d = x.reshape(-1, n_input)                    # (8, 16)
    B = x2d.shape[0]

    dims = [(n_input, hidden_units), (hidden_units, hidden_units), (hidden_units, n_output)]
    kp0, kp1, kp2 = jax.random.split(kp, 3)
    layer_params = [init_layer(kp0, *dims[0], rho_init),
                    init_layer(kp1, *dims[1], rho_init),
                    init_layer(kp2, *dims[2], rho_init)]

    # per-sample epsilon draws (each sample == one stochastic forward of the torch module)
    eps_samples = []
    for ks in jax.random.split(ke, n_samples):
        eps_layers = []
        for kl, (n_in, n_out) in zip(jax.random.split(ks, len(dims)), dims):
            kw, kb = jax.random.split(kl)
            eps_layers.append(dict(eps_w=jax.random.normal(kw, (n_out, n_in), jnp.float32),
                                   eps_b=jax.random.normal(kb, (1, n_out), jnp.float32)))
        eps_samples.append(eps_layers)

    # init-time packing (not in the per-step path)
    layout = make_layout(dims)
    mu_rho_pack = pack_mu_rho(layer_params, layout)                    # (2, R, 128)
    eps_pack = jnp.stack([pack_eps(e, layout) for e in eps_samples])   # (S, R, 128)

    forward = build_bnn_forward(layout, batch=B, n_classes=n_output, n_samples=n_samples,
                                pi=pi, s1=s1, s2=s2, mixture=mixture)
    out, lpw, lqw = forward(x2d, mu_rho_pack, eps_pack)
    out = jax.block_until_ready(out)
    lpw = jax.block_until_ready(lpw)
    lqw = jax.block_until_ready(lqw)

    # verify every MC sample against the plain-JAX reference forward
    for s in range(n_samples):
        params_s = [dict(**p, **e) for p, e in zip(layer_params, eps_samples[s])]
        out_ref, lpw_ref, lqw_ref = bnn_forward_ref(
            x2d, params_s, pi=pi, s1=s1, s2=s2, mixture=mixture)
        np.testing.assert_allclose(np.asarray(out[s]), np.asarray(out_ref),
                                   rtol=1e-3, atol=1e-4)
        np.testing.assert_allclose(float(lpw[s]), float(lpw_ref), rtol=1e-3, atol=1e-2)
        np.testing.assert_allclose(float(lqw[s]), float(lqw_ref), rtol=1e-3, atol=1e-2)
        np.testing.assert_allclose(np.asarray(out[s]).sum(axis=1), np.ones(B),
                                   rtol=1e-4, atol=1e-4)

    print("KERNEL_OK")
</pallas_src>

<mosaic_0001>
module attributes {stable_mosaic.version = 11 : i64} {
  func.func @kernel(%arg0: memref<8x16xf32, #tpu.memory_space<vmem>>, %arg1: memref<2x88x128xf32, #tpu.memory_space<vmem>>, %arg2: memref<4x88x128xf32, #tpu.memory_space<vmem>>, %arg3: memref<4x8x128xf32, #tpu.memory_space<vmem>>, %arg4: memref<4xf32, #tpu.memory_space<smem>>, %arg5: memref<4xf32, #tpu.memory_space<smem>>) attributes {dimension_semantics = [], scalar_prefetch = 0 : i64, scratch_operands = 0 : i64, tpu.core_type = #tpu.core_type<tc>} {
    %c0 = arith.constant 0 : index
    %c0_0 = arith.constant 0 : index
    %c0_1 = arith.constant 0 : index
    %0 = vector.load %arg1[%c0, %c0_0, %c0_1] : memref<2x88x128xf32, #tpu.memory_space<vmem>>, vector<1x88x128xf32>
    %1 = vector.shape_cast %0 : vector<1x88x128xf32> to vector<88x128xf32>
    %c1 = arith.constant 1 : index
    %c0_2 = arith.constant 0 : index
    %c0_3 = arith.constant 0 : index
    %2 = vector.load %arg1[%c1, %c0_2, %c0_3] : memref<2x88x128xf32, #tpu.memory_space<vmem>>, vector<1x88x128xf32>
    %3 = vector.shape_cast %2 : vector<1x88x128xf32> to vector<88x128xf32>
    %4 = math.exp %3 : vector<88x128xf32>
    %cst = arith.constant 1.000000e+00 : f32
    %5 = vector.broadcast %cst : f32 to vector<88x128xf32>
    %6 = arith.addf %5, %4 : vector<88x128xf32>
    %7 = math.log %6 : vector<88x128xf32>
    %8 = tpu.reciprocal %4 {approx = true} : vector<88x128xf32> -> vector<88x128xf32>
    %9 = arith.mulf %4, %8 : vector<88x128xf32>
    %cst_4 = arith.constant 2.000000e+00 : f32
    %10 = vector.broadcast %cst_4 : f32 to vector<88x128xf32>
    %11 = arith.subf %10, %9 : vector<88x128xf32>
    %12 = arith.mulf %8, %11 : vector<88x128xf32>
    %13 = vector.shape_cast %3 : vector<88x128xf32> to vector<1x88x128xf32>
    %cst_5 = arith.constant dense<0.000000e+00> : vector<1xf32>
    %14 = vector.multi_reduction <add>, %13, %cst_5 [1, 2] : vector<1x88x128xf32> to vector<1xf32>
    %15 = vector.shape_cast %14 : vector<1xf32> to vector<1x1x1xf32>
    %16 = vector.extract %15[0, 0, 0] : f32 from vector<1x1x1xf32>
    %c0_6 = arith.constant 0 : index
    %c0_7 = arith.constant 0 : index
    %17 = vector.load %arg0[%c0_6, %c0_7] : memref<8x16xf32, #tpu.memory_space<vmem>>, vector<8x16xf32>
    %c0_8 = arith.constant 0 : index
    %c0_9 = arith.constant 0 : index
    %c0_10 = arith.constant 0 : index
    %18 = vector.load %arg2[%c0_8, %c0_9, %c0_10] : memref<4x88x128xf32, #tpu.memory_space<vmem>>, vector<1x88x128xf32>
    %19 = vector.shape_cast %18 : vector<1x88x128xf32> to vector<88x128xf32>
    %20 = arith.mulf %7, %19 : vector<88x128xf32>
    %21 = arith.addf %1, %20 : vector<88x128xf32>
    %22 = arith.mulf %20, %12 : vector<88x128xf32>
    %cst_11 = arith.constant -1712.90137 : f32
    %23 = arith.subf %cst_11, %16 : f32
    %24 = arith.mulf %22, %22 : vector<88x128xf32>
    %25 = vector.shape_cast %24 : vector<88x128xf32> to vector<1x88x128xf32>
    %cst_12 = arith.constant dense<0.000000e+00> : vector<1xf32>
    %26 = vector.multi_reduction <add>, %25, %cst_12 [1, 2] : vector<1x88x128xf32> to vector<1xf32>
    %27 = vector.shape_cast %26 : vector<1xf32> to vector<1x1x1xf32>
    %28 = vector.extract %27[0, 0, 0] : f32 from vector<1x1x1xf32>
    %cst_13 = arith.constant 5.000000e-01 : f32
    %29 = arith.mulf %cst_13, %28 : f32
    %30 = arith.subf %23, %29 : f32
    %c0_14 = arith.constant 0 : index
    %31 = memref.load %arg5[%c0_14] : memref<4xf32, #tpu.memory_space<smem>>
    memref.store %30, %arg5[%c0_14] : memref<4xf32, #tpu.memory_space<smem>>
    %32 = arith.mulf %21, %21 : vector<88x128xf32>
    %cst_15 = arith.constant -7.500000e+00 : f32
    %33 = vector.broadcast %cst_15 : f32 to vector<88x128xf32>
    %34 = arith.mulf %33, %32 : vector<88x128xf32>
    %35 = math.exp %34 : vector<88x128xf32>
    %cst_16 = arith.constant 8.000000e-01 : f32
    %36 = vector.broadcast %cst_16 : f32 to vector<88x128xf32>
    %37 = arith.mulf %36, %35 : vector<88x128xf32>
    %cst_17 = arith.constant 2.000000e-01 : f32
    %38 = vector.broadcast %cst_17 : f32 to vector<88x128xf32>
    %39 = arith.addf %38, %37 : vector<88x128xf32>
    %40 = math.log %39 : vector<88x128xf32>
    %cst_18 = arith.constant 5.000000e-01 : f32
    %41 = vector.broadcast %cst_18 : f32 to vector<88x128xf32>
    %42 = arith.mulf %41, %32 : vector<88x128xf32>
    %43 = arith.subf %40, %42 : vector<88x128xf32>
    %44 = vector.shape_cast %43 : vector<88x128xf32> to vector<1x88x128xf32>
    %cst_19 = arith.constant dense<0.000000e+00> : vector<1xf32>
    %45 = vector.multi_reduction <add>, %44, %cst_19 [1, 2] : vector<1x88x128xf32> to vector<1xf32>
    %46 = vector.shape_cast %45 : vector<1xf32> to vector<1x1x1xf32>
    %47 = vector.extract %46[0, 0, 0] : f32 from vector<1x1x1xf32>
    %cst_20 = arith.constant -4.93550158 : f32
    %48 = arith.addf %47, %cst_20 : f32
    %c0_21 = arith.constant 0 : index
    %49 = memref.load %arg4[%c0_21] : memref<4xf32, #tpu.memory_space<smem>>
    memref.store %48, %arg4[%c0_21] : memref<4xf32, #tpu.memory_space<smem>>
    %50 = vector.extract_strided_slice %21 {offsets = [0, 0], sizes = [16, 128], strides = [1, 1]} : vector<88x128xf32> to vector<16x128xf32>
    %51 = vector.extract_strided_slice %21 {offsets = [80, 0], sizes = [1, 128], strides = [1, 1]} : vector<88x128xf32> to vector<1x128xf32>
    %cst_22 = arith.constant dense<0.000000e+00> : vector<8x128xf32>
    %52 = tpu.matmul %17, %50, %cst_22 {dimension_numbers = #tpu.dot_dimension_numbers<[1], [0], [0], [1], [0, 0, 1, 1], [], []>} : vector<8x16xf32>, vector<16x128xf32>, vector<8x128xf32> -> vector<8x128xf32>
    %53 = vector.broadcast %51 : vector<1x128xf32> to vector<8x128xf32>
    %54 = arith.addf %52, %53 : vector<8x128xf32>
    %cst_23 = arith.constant 0.000000e+00 : f32
    %55 = vector.broadcast %cst_23 : f32 to vector<8x128xf32>
    %56 = arith.maximumf %54, %55 : vector<8x128xf32>
    %57 = vector.extract_strided_slice %56 {offsets = [0, 0], sizes = [8, 32], strides = [1, 1]} : vector<8x128xf32> to vector<8x32xf32>
    %58 = vector.extract_strided_slice %21 {offsets = [16, 0], sizes = [32, 128], strides = [1, 1]} : vector<88x128xf32> to vector<32x128xf32>
    %59 = vector.extract_strided_slice %21 {offsets = [81, 0], sizes = [1, 128], strides = [1, 1]} : vector<88x128xf32> to vector<1x128xf32>
    %cst_24 = arith.constant dense<0.000000e+00> : vector<8x128xf32>
    %60 = tpu.matmul %57, %58, %cst_24 {dimension_numbers = #tpu.dot_dimension_numbers<[1], [0], [0], [1], [0, 0, 1, 1], [], []>} : vector<8x32xf32>, vector<32x128xf32>, vector<8x128xf32> -> vector<8x128xf32>
    %61 = vector.broadcast %59 : vector<1x128xf32> to vector<8x128xf32>
    %62 = arith.addf %60, %61 : vector<8x128xf32>
    %cst_25 = arith.constant 0.000000e+00 : f32
    %63 = vector.broadcast %cst_25 : f32 to vector<8x128xf32>
    %64 = arith.maximumf %62, %63 : vector<8x128xf32>
    %65 = vector.extract_strided_slice %64 {offsets = [0, 0], sizes = [8, 32], strides = [1, 1]} : vector<8x128xf32> to vector<8x32xf32>
    %66 = vector.extract_strided_slice %21 {offsets = [48, 0], sizes = [32, 128], strides = [1, 1]} : vector<88x128xf32> to vector<32x128xf32>
    %67 = vector.extract_strided_slice %21 {offsets = [82, 0], sizes = [1, 128], strides = [1, 1]} : vector<88x128xf32> to vector<1x128xf32>
    %cst_26 = arith.constant dense<0.000000e+00> : vector<8x128xf32>
    %68 = tpu.matmul %65, %66, %cst_26 {dimension_numbers = #tpu.dot_dimension_numbers<[1], [0], [0], [1], [0, 0, 1, 1], [], []>} : vector<8x32xf32>, vector<32x128xf32>, vector<8x128xf32> -> vector<8x128xf32>
    %69 = vector.broadcast %67 : vector<1x128xf32> to vector<8x128xf32>
    %70 = arith.addf %68, %69 : vector<8x128xf32>
    %71 = tpu.iota {dimensions = array<i32: 1>} : vector<8x128xi32>
    %c8_i32 = arith.constant 8 : i32
    %72 = vector.broadcast %c8_i32 : i32 to vector<8x128xi32>
    %73 = arith.cmpi slt, %71, %72 : vector<8x128xi32>
    %cst_27 = arith.constant -1.000000e+30 : f32
    %74 = vector.broadcast %cst_27 : f32 to vector<8x128xf32>
    %75 = arith.select %73, %70, %74 : vector<8x128xi1>, vector<8x128xf32>
    %cst_28 = arith.constant dense<0xFF800000> : vector<8xf32>
    %76 = vector.multi_reduction <maximumf>, %75, %cst_28 [1] : vector<8x128xf32> to vector<8xf32>
    %77 = vector.shape_cast %76 : vector<8xf32> to vector<8x1xf32>
    %78 = vector.broadcast %77 : vector<8x1xf32> to vector<8x128xf32>
    %79 = arith.subf %75, %78 : vector<8x128xf32>
    %80 = math.exp %79 : vector<8x128xf32>
    %cst_29 = arith.constant dense<0.000000e+00> : vector<8xf32>
    %81 = vector.multi_reduction <add>, %80, %cst_29 [1] : vector<8x128xf32> to vector<8xf32>
    %82 = vector.shape_cast %81 : vector<8xf32> to vector<8x1xf32>
    %83 = tpu.reciprocal %82 {approx = true} : vector<8x1xf32> -> vector<8x1xf32>
    %84 = arith.mulf %82, %83 : vector<8x1xf32>
    %cst_30 = arith.constant 2.000000e+00 : f32
    %85 = vector.broadcast %cst_30 : f32 to vector<8x1xf32>
    %86 = arith.subf %85, %84 : vector<8x1xf32>
    %87 = arith.mulf %83, %86 : vector<8x1xf32>
    %88 = vector.broadcast %87 : vector<8x1xf32> to vector<8x128xf32>
    %89 = arith.mulf %80, %88 : vector<8x128xf32>
    %c0_31 = arith.constant 0 : index
    %c0_32 = arith.constant 0 : index
    %c0_33 = arith.constant 0 : index
    %90 = vector.load %arg3[%c0_31, %c0_32, %c0_33] : memref<4x8x128xf32, #tpu.memory_space<vmem>>, vector<1x8x128xf32>
    %91 = vector.shape_cast %90 : vector<1x8x128xf32> to vector<8x128xf32>
    %92 = vector.shape_cast %89 : vector<8x128xf32> to vector<1x8x128xf32>
    tpu.vector_store %arg3[%c0_31, %c0_32, %c0_33], %92 {strides = array<i32>} : memref<4x8x128xf32, #tpu.memory_space<vmem>>, vector<1x8x128xf32>,
    %c1_34 = arith.constant 1 : index
    %c0_35 = arith.constant 0 : index
    %c0_36 = arith.constant 0 : index
    %93 = vector.load %arg2[%c1_34, %c0_35, %c0_36] : memref<4x88x128xf32, #tpu.memory_space<vmem>>, vector<1x88x128xf32>
    %94 = vector.shape_cast %93 : vector<1x88x128xf32> to vector<88x128xf32>
    %95 = arith.mulf %7, %94 : vector<88x128xf32>
    %96 = arith.addf %1, %95 : vector<88x128xf32>
    %97 = arith.mulf %95, %12 : vector<88x128xf32>
    %cst_37 = arith.constant -1712.90137 : f32
    %98 = arith.subf %cst_37, %16 : f32
    %99 = arith.mulf %97, %97 : vector<88x128xf32>
    %100 = vector.shape_cast %99 : vector<88x128xf32> to vector<1x88x128xf32>
    %cst_38 = arith.constant dense<0.000000e+00> : vector<1xf32>
    %101 = vector.multi_reduction <add>, %100, %cst_38 [1, 2] : vector<1x88x128xf32> to vector<1xf32>
    %102 = vector.shape_cast %101 : vector<1xf32> to vector<1x1x1xf32>
    %103 = vector.extract %102[0, 0, 0] : f32 from vector<1x1x1xf32>
    %cst_39 = arith.constant 5.000000e-01 : f32
    %104 = arith.mulf %cst_39, %103 : f32
    %105 = arith.subf %98, %104 : f32
    %c1_40 = arith.constant 1 : index
    %106 = memref.load %arg5[%c1_40] : memref<4xf32, #tpu.memory_space<smem>>
    memref.store %105, %arg5[%c1_40] : memref<4xf32, #tpu.memory_space<smem>>
    %107 = arith.mulf %96, %96 : vector<88x128xf32>
    %cst_41 = arith.constant -7.500000e+00 : f32
    %108 = vector.broadcast %cst_41 : f32 to vector<88x128xf32>
    %109 = arith.mulf %108, %107 : vector<88x128xf32>
    %110 = math.exp %109 : vector<88x128xf32>
    %cst_42 = arith.constant 8.000000e-01 : f32
    %111 = vector.broadcast %cst_42 : f32 to vector<88x128xf32>
    %112 = arith.mulf %111, %110 : vector<88x128xf32>
    %cst_43 = arith.constant 2.000000e-01 : f32
    %113 = vector.broadcast %cst_43 : f32 to vector<88x128xf32>
    %114 = arith.addf %113, %112 : vector<88x128xf32>
    %115 = math.log %114 : vector<88x128xf32>
    %cst_44 = arith.constant 5.000000e-01 : f32
    %116 = vector.broadcast %cst_44 : f32 to vector<88x128xf32>
    %117 = arith.mulf %116, %107 : vector<88x128xf32>
    %118 = arith.subf %115, %117 : vector<88x128xf32>
    %119 = vector.shape_cast %118 : vector<88x128xf32> to vector<1x88x128xf32>
    %cst_45 = arith.constant dense<0.000000e+00> : vector<1xf32>
    %120 = vector.multi_reduction <add>, %119, %cst_45 [1, 2] : vector<1x88x128xf32> to vector<1xf32>
    %121 = vector.shape_cast %120 : vector<1xf32> to vector<1x1x1xf32>
    %122 = vector.extract %121[0, 0, 0] : f32 from vector<1x1x1xf32>
    %cst_46 = arith.constant -4.93550158 : f32
    %123 = arith.addf %122, %cst_46 : f32
    %c1_47 = arith.constant 1 : index
    %124 = memref.load %arg4[%c1_47] : memref<4xf32, #tpu.memory_space<smem>>
    memref.store %123, %arg4[%c1_47] : memref<4xf32, #tpu.memory_space<smem>>
    %125 = vector.extract_strided_slice %96 {offsets = [0, 0], sizes = [16, 128], strides = [1, 1]} : vector<88x128xf32> to vector<16x128xf32>
    %126 = vector.extract_strided_slice %96 {offsets = [80, 0], sizes = [1, 128], strides = [1, 1]} : vector<88x128xf32> to vector<1x128xf32>
    %cst_48 = arith.constant dense<0.000000e+00> : vector<8x128xf32>
    %127 = tpu.matmul %17, %125, %cst_48 {dimension_numbers = #tpu.dot_dimension_numbers<[1], [0], [0], [1], [0, 0, 1, 1], [], []>} : vector<8x16xf32>, vector<16x128xf32>, vector<8x128xf32> -> vector<8x128xf32>
    %128 = vector.broadcast %126 : vector<1x128xf32> to vector<8x128xf32>
    %129 = arith.addf %127, %128 : vector<8x128xf32>
    %cst_49 = arith.constant 0.000000e+00 : f32
    %130 = vector.broadcast %cst_49 : f32 to vector<8x128xf32>
    %131 = arith.maximumf %129, %130 : vector<8x128xf32>
    %132 = vector.extract_strided_slice %131 {offsets = [0, 0], sizes = [8, 32], strides = [1, 1]} : vector<8x128xf32> to vector<8x32xf32>
    %133 = vector.extract_strided_slice %96 {offsets = [16, 0], sizes = [32, 128], strides = [1, 1]} : vector<88x128xf32> to vector<32x128xf32>
    %134 = vector.extract_strided_slice %96 {offsets = [81, 0], sizes = [1, 128], strides = [1, 1]} : vector<88x128xf32> to vector<1x128xf32>
    %cst_50 = arith.constant dense<0.000000e+00> : vector<8x128xf32>
    %135 = tpu.matmul %132, %133, %cst_50 {dimension_numbers = #tpu.dot_dimension_numbers<[1], [0], [0], [1], [0, 0, 1, 1], [], []>} : vector<8x32xf32>, vector<32x128xf32>, vector<8x128xf32> -> vector<8x128xf32>
    %136 = vector.broadcast %134 : vector<1x128xf32> to vector<8x128xf32>
    %137 = arith.addf %135, %136 : vector<8x128xf32>
    %cst_51 = arith.constant 0.000000e+00 : f32
    %138 = vector.broadcast %cst_51 : f32 to vector<8x128xf32>
    %139 = arith.maximumf %137, %138 : vector<8x128xf32>
    %140 = vector.extract_strided_slice %139 {offsets = [0, 0], sizes = [8, 32], strides = [1, 1]} : vector<8x128xf32> to vector<8x32xf32>
    %141 = vector.extract_strided_slice %96 {offsets = [48, 0], sizes = [32, 128], strides = [1, 1]} : vector<88x128xf32> to vector<32x128xf32>
    %142 = vector.extract_strided_slice %96 {offsets = [82, 0], sizes = [1, 128], strides = [1, 1]} : vector<88x128xf32> to vector<1x128xf32>
    %cst_52 = arith.constant dense<0.000000e+00> : vector<8x128xf32>
    %143 = tpu.matmul %140, %141, %cst_52 {dimension_numbers = #tpu.dot_dimension_numbers<[1], [0], [0], [1], [0, 0, 1, 1], [], []>} : vector<8x32xf32>, vector<32x128xf32>, vector<8x128xf32> -> vector<8x128xf32>
    %144 = vector.broadcast %142 : vector<1x128xf32> to vector<8x128xf32>
    %145 = arith.addf %143, %144 : vector<8x128xf32>
    %146 = tpu.iota {dimensions = array<i32: 1>} : vector<8x128xi32>
    %c8_i32_53 = arith.constant 8 : i32
    %147 = vector.broadcast %c8_i32_53 : i32 to vector<8x128xi32>
    %148 = arith.cmpi slt, %146, %147 : vector<8x128xi32>
    %cst_54 = arith.constant -1.000000e+30 : f32
    %149 = vector.broadcast %cst_54 : f32 to vector<8x128xf32>
    %150 = arith.select %148, %145, %149 : vector<8x128xi1>, vector<8x128xf32>
    %cst_55 = arith.constant dense<0xFF800000> : vector<8xf32>
    %151 = vector.multi_reduction <maximumf>, %150, %cst_55 [1] : vector<8x128xf32> to vector<8xf32>
    %152 = vector.shape_cast %151 : vector<8xf32> to vector<8x1xf32>
    %153 = vector.broadcast %152 : vector<8x1xf32> to vector<8x128xf32>
    %154 = arith.subf %150, %153 : vector<8x128xf32>
    %155 = math.exp %154 : vector<8x128xf32>
    %cst_56 = arith.constant dense<0.000000e+00> : vector<8xf32>
    %156 = vector.multi_reduction <add>, %155, %cst_56 [1] : vector<8x128xf32> to vector<8xf32>
    %157 = vector.shape_cast %156 : vector<8xf32> to vector<8x1xf32>
    %158 = tpu.reciprocal %157 {approx = true} : vector<8x1xf32> -> vector<8x1xf32>
    %159 = arith.mulf %157, %158 : vector<8x1xf32>
    %cst_57 = arith.constant 2.000000e+00 : f32
    %160 = vector.broadcast %cst_57 : f32 to vector<8x1xf32>
    %161 = arith.subf %160, %159 : vector<8x1xf32>
    %162 = arith.mulf %158, %161 : vector<8x1xf32>
    %163 = vector.broadcast %162 : vector<8x1xf32> to vector<8x128xf32>
    %164 = arith.mulf %155, %163 : vector<8x128xf32>
    %c1_58 = arith.constant 1 : index
    %c0_59 = arith.constant 0 : index
    %c0_60 = arith.constant 0 : index
    %165 = vector.load %arg3[%c1_58, %c0_59, %c0_60] : memref<4x8x128xf32, #tpu.memory_space<vmem>>, vector<1x8x128xf32>
    %166 = vector.shape_cast %165 : vector<1x8x128xf32> to vector<8x128xf32>
    %167 = vector.shape_cast %164 : vector<8x128xf32> to vector<1x8x128xf32>
    tpu.vector_store %arg3[%c1_58, %c0_59, %c0_60], %167 {strides = array<i32>} : memref<4x8x128xf32, #tpu.memory_space<vmem>>, vector<1x8x128xf32>,
    %c2 = arith.constant 2 : index
    %c0_61 = arith.constant 0 : index
    %c0_62 = arith.constant 0 : index
    %168 = vector.load %arg2[%c2, %c0_61, %c0_62] : memref<4x88x128xf32, #tpu.memory_space<vmem>>, vector<1x88x128xf32>
    %169 = vector.shape_cast %168 : vector<1x88x128xf32> to vector<88x128xf32>
    %170 = arith.mulf %7, %169 : vector<88x128xf32>
    %171 = arith.addf %1, %170 : vector<88x128xf32>
    %172 = arith.mulf %170, %12 : vector<88x128xf32>
    %cst_63 = arith.constant -1712.90137 : f32
    %173 = arith.subf %cst_63, %16 : f32
    %174 = arith.mulf %172, %172 : vector<88x128xf32>
    %175 = vector.shape_cast %174 : vector<88x128xf32> to vector<1x88x128xf32>
    %cst_64 = arith.constant dense<0.000000e+00> : vector<1xf32>
    %176 = vector.multi_reduction <add>, %175, %cst_64 [1, 2] : vector<1x88x128xf32> to vector<1xf32>
    %177 = vector.shape_cast %176 : vector<1xf32> to vector<1x1x1xf32>
    %178 = vector.extract %177[0, 0, 0] : f32 from vector<1x1x1xf32>
    %cst_65 = arith.constant 5.000000e-01 : f32
    %179 = arith.mulf %cst_65, %178 : f32
    %180 = arith.subf %173, %179 : f32
    %c2_66 = arith.constant 2 : index
    %181 = memref.load %arg5[%c2_66] : memref<4xf32, #tpu.memory_space<smem>>
    memref.store %180, %arg5[%c2_66] : memref<4xf32, #tpu.memory_space<smem>>
    %182 = arith.mulf %171, %171 : vector<88x128xf32>
    %cst_67 = arith.constant -7.500000e+00 : f32
    %183 = vector.broadcast %cst_67 : f32 to vector<88x128xf32>
    %184 = arith.mulf %183, %182 : vector<88x128xf32>
    %185 = math.exp %184 : vector<88x128xf32>
    %cst_68 = arith.constant 8.000000e-01 : f32
    %186 = vector.broadcast %cst_68 : f32 to vector<88x128xf32>
    %187 = arith.mulf %186, %185 : vector<88x128xf32>
    %cst_69 = arith.constant 2.000000e-01 : f32
    %188 = vector.broadcast %cst_69 : f32 to vector<88x128xf32>
    %189 = arith.addf %188, %187 : vector<88x128xf32>
    %190 = math.log %189 : vector<88x128xf32>
    %cst_70 = arith.constant 5.000000e-01 : f32
    %191 = vector.broadcast %cst_70 : f32 to vector<88x128xf32>
    %192 = arith.mulf %191, %182 : vector<88x128xf32>
    %193 = arith.subf %190, %192 : vector<88x128xf32>
    %194 = vector.shape_cast %193 : vector<88x128xf32> to vector<1x88x128xf32>
    %cst_71 = arith.constant dense<0.000000e+00> : vector<1xf32>
    %195 = vector.multi_reduction <add>, %194, %cst_71 [1, 2] : vector<1x88x128xf32> to vector<1xf32>
    %196 = vector.shape_cast %195 : vector<1xf32> to vector<1x1x1xf32>
    %197 = vector.extract %196[0, 0, 0] : f32 from vector<1x1x1xf32>
    %cst_72 = arith.constant -4.93550158 : f32
    %198 = arith.addf %197, %cst_72 : f32
    %c2_73 = arith.constant 2 : index
    %199 = memref.load %arg4[%c2_73] : memref<4xf32, #tpu.memory_space<smem>>
    memref.store %198, %arg4[%c2_73] : memref<4xf32, #tpu.memory_space<smem>>
    %200 = vector.extract_strided_slice %171 {offsets = [0, 0], sizes = [16, 128], strides = [1, 1]} : vector<88x128xf32> to vector<16x128xf32>
    %201 = vector.extract_strided_slice %171 {offsets = [80, 0], sizes = [1, 128], strides = [1, 1]} : vector<88x128xf32> to vector<1x128xf32>
    %cst_74 = arith.constant dense<0.000000e+00> : vector<8x128xf32>
    %202 = tpu.matmul %17, %200, %cst_74 {dimension_numbers = #tpu.dot_dimension_numbers<[1], [0], [0], [1], [0, 0, 1, 1], [], []>} : vector<8x16xf32>, vector<16x128xf32>, vector<8x128xf32> -> vector<8x128xf32>
    %203 = vector.broadcast %201 : vector<1x128xf32> to vector<8x128xf32>
    %204 = arith.addf %202, %203 : vector<8x128xf32>
    %cst_75 = arith.constant 0.000000e+00 : f32
    %205 = vector.broadcast %cst_75 : f32 to vector<8x128xf32>
    %206 = arith.maximumf %204, %205 : vector<8x128xf32>
    %207 = vector.extract_strided_slice %206 {offsets = [0, 0], sizes = [8, 32], strides = [1, 1]} : vector<8x128xf32> to vector<8x32xf32>
    %208 = vector.extract_strided_slice %171 {offsets = [16, 0], sizes = [32, 128], strides = [1, 1]} : vector<88x128xf32> to vector<32x128xf32>
    %209 = vector.extract_strided_slice %171 {offsets = [81, 0], sizes = [1, 128], strides = [1, 1]} : vector<88x128xf32> to vector<1x128xf32>
    %cst_76 = arith.constant dense<0.000000e+00> : vector<8x128xf32>
    %210 = tpu.matmul %207, %208, %cst_76 {dimension_numbers = #tpu.dot_dimension_numbers<[1], [0], [0], [1], [0, 0, 1, 1], [], []>} : vector<8x32xf32>, vector<32x128xf32>, vector<8x128xf32> -> vector<8x128xf32>
    %211 = vector.broadcast %209 : vector<1x128xf32> to vector<8x128xf32>
    %212 = arith.addf %210, %211 : vector<8x128xf32>
    %cst_77 = arith.constant 0.000000e+00 : f32
    %213 = vector.broadcast %cst_77 : f32 to vector<8x128xf32>
    %214 = arith.maximumf %212, %213 : vector<8x128xf32>
    %215 = vector.extract_strided_slice %214 {offsets = [0, 0], sizes = [8, 32], strides = [1, 1]} : vector<8x128xf32> to vector<8x32xf32>
    %216 = vector.extract_strided_slice %171 {offsets = [48, 0], sizes = [32, 128], strides = [1, 1]} : vector<88x128xf32> to vector<32x128xf32>
    %217 = vector.extract_strided_slice %171 {offsets = [82, 0], sizes = [1, 128], strides = [1, 1]} : vector<88x128xf32> to vector<1x128xf32>
    %cst_78 = arith.constant dense<0.000000e+00> : vector<8x128xf32>
    %218 = tpu.matmul %215, %216, %cst_78 {dimension_numbers = #tpu.dot_dimension_numbers<[1], [0], [0], [1], [0, 0, 1, 1], [], []>} : vector<8x32xf32>, vector<32x128xf32>, vector<8x128xf32> -> vector<8x128xf32>
    %219 = vector.broadcast %217 : vector<1x128xf32> to vector<8x128xf32>
    %220 = arith.addf %218, %219 : vector<8x128xf32>
    %221 = tpu.iota {dimensions = array<i32: 1>} : vector<8x128xi32>
    %c8_i32_79 = arith.constant 8 : i32
    %222 = vector.broadcast %c8_i32_79 : i32 to vector<8x128xi32>
    %223 = arith.cmpi slt, %221, %222 : vector<8x128xi32>
    %cst_80 = arith.constant -1.000000e+30 : f32
    %224 = vector.broadcast %cst_80 : f32 to vector<8x128xf32>
    %225 = arith.select %223, %220, %224 : vector<8x128xi1>, vector<8x128xf32>
    %cst_81 = arith.constant dense<0xFF800000> : vector<8xf32>
    %226 = vector.multi_reduction <maximumf>, %225, %cst_81 [1] : vector<8x128xf32> to vector<8xf32>
    %227 = vector.shape_cast %226 : vector<8xf32> to vector<8x1xf32>
    %228 = vector.broadcast %227 : vector<8x1xf32> to vector<8x128xf32>
    %229 = arith.subf %225, %228 : vector<8x128xf32>
    %230 = math.exp %229 : vector<8x128xf32>
    %cst_82 = arith.constant dense<0.000000e+00> : vector<8xf32>
    %231 = vector.multi_reduction <add>, %230, %cst_82 [1] : vector<8x128xf32> to vector<8xf32>
    %232 = vector.shape_cast %231 : vector<8xf32> to vector<8x1xf32>
    %233 = tpu.reciprocal %232 {approx = true} : vector<8x1xf32> -> vector<8x1xf32>
    %234 = arith.mulf %232, %233 : vector<8x1xf32>
    %cst_83 = arith.constant 2.000000e+00 : f32
    %235 = vector.broadcast %cst_83 : f32 to vector<8x1xf32>
    %236 = arith.subf %235, %234 : vector<8x1xf32>
    %237 = arith.mulf %233, %236 : vector<8x1xf32>
    %238 = vector.broadcast %237 : vector<8x1xf32> to vector<8x128xf32>
    %239 = arith.mulf %230, %238 : vector<8x128xf32>
    %c2_84 = arith.constant 2 : index
    %c0_85 = arith.constant 0 : index
    %c0_86 = arith.constant 0 : index
    %240 = vector.load %arg3[%c2_84, %c0_85, %c0_86] : memref<4x8x128xf32, #tpu.memory_space<vmem>>, vector<1x8x128xf32>
    %241 = vector.shape_cast %240 : vector<1x8x128xf32> to vector<8x128xf32>
    %242 = vector.shape_cast %239 : vector<8x128xf32> to vector<1x8x128xf32>
    tpu.vector_store %arg3[%c2_84, %c0_85, %c0_86], %242 {strides = array<i32>} : memref<4x8x128xf32, #tpu.memory_space<vmem>>, vector<1x8x128xf32>,
    %c3 = arith.constant 3 : index
    %c0_87 = arith.constant 0 : index
    %c0_88 = arith.constant 0 : index
    %243 = vector.load %arg2[%c3, %c0_87, %c0_88] : memref<4x88x128xf32, #tpu.memory_space<vmem>>, vector<1x88x128xf32>
    %244 = vector.shape_cast %243 : vector<1x88x128xf32> to vector<88x128xf32>
    %245 = arith.mulf %7, %244 : vector<88x128xf32>
    %246 = arith.addf %1, %245 : vector<88x128xf32>
    %247 = arith.mulf %245, %12 : vector<88x128xf32>
    %cst_89 = arith.constant -1712.90137 : f32
    %248 = arith.subf %cst_89, %16 : f32
    %249 = arith.mulf %247, %247 : vector<88x128xf32>
    %250 = vector.shape_cast %249 : vector<88x128xf32> to vector<1x88x128xf32>
    %cst_90 = arith.constant dense<0.000000e+00> : vector<1xf32>
    %251 = vector.multi_reduction <add>, %250, %cst_90 [1, 2] : vector<1x88x128xf32> to vector<1xf32>
    %252 = vector.shape_cast %251 : vector<1xf32> to vector<1x1x1xf32>
    %253 = vector.extract %252[0, 0, 0] : f32 from vector<1x1x1xf32>
    %cst_91 = arith.constant 5.000000e-01 : f32
    %254 = arith.mulf %cst_91, %253 : f32
    %255 = arith.subf %248, %254 : f32
    %c3_92 = arith.constant 3 : index
    %256 = memref.load %arg5[%c3_92] : memref<4xf32, #tpu.memory_space<smem>>
    memref.store %255, %arg5[%c3_92] : memref<4xf32, #tpu.memory_space<smem>>
    %257 = arith.mulf %246, %246 : vector<88x128xf32>
    %cst_93 = arith.constant -7.500000e+00 : f32
    %258 = vector.broadcast %cst_93 : f32 to vector<88x128xf32>
    %259 = arith.mulf %258, %257 : vector<88x128xf32>
    %260 = math.exp %259 : vector<88x128xf32>
    %cst_94 = arith.constant 8.000000e-01 : f32
    %261 = vector.broadcast %cst_94 : f32 to vector<88x128xf32>
    %262 = arith.mulf %261, %260 : vector<88x128xf32>
    %cst_95 = arith.constant 2.000000e-01 : f32
    %263 = vector.broadcast %cst_95 : f32 to vector<88x128xf32>
    %264 = arith.addf %263, %262 : vector<88x128xf32>
    %265 = math.log %264 : vector<88x128xf32>
    %cst_96 = arith.constant 5.000000e-01 : f32
    %266 = vector.broadcast %cst_96 : f32 to vector<88x128xf32>
    %267 = arith.mulf %266, %257 : vector<88x128xf32>
    %268 = arith.subf %265, %267 : vector<88x128xf32>
    %269 = vector.shape_cast %268 : vector<88x128xf32> to vector<1x88x128xf32>
    %cst_97 = arith.constant dense<0.000000e+00> : vector<1xf32>
    %270 = vector.multi_reduction <add>, %269, %cst_97 [1, 2] : vector<1x88x128xf32> to vector<1xf32>
    %271 = vector.shape_cast %270 : vector<1xf32> to vector<1x1x1xf32>
    %272 = vector.extract %271[0, 0, 0] : f32 from vector<1x1x1xf32>
    %cst_98 = arith.constant -4.93550158 : f32
    %273 = arith.addf %272, %cst_98 : f32
    %c3_99 = arith.constant 3 : index
    %274 = memref.load %arg4[%c3_99] : memref<4xf32, #tpu.memory_space<smem>>
    memref.store %273, %arg4[%c3_99] : memref<4xf32, #tpu.memory_space<smem>>
    %275 = vector.extract_strided_slice %246 {offsets = [0, 0], sizes = [16, 128], strides = [1, 1]} : vector<88x128xf32> to vector<16x128xf32>
    %276 = vector.extract_strided_slice %246 {offsets = [80, 0], sizes = [1, 128], strides = [1, 1]} : vector<88x128xf32> to vector<1x128xf32>
    %cst_100 = arith.constant dense<0.000000e+00> : vector<8x128xf32>
    %277 = tpu.matmul %17, %275, %cst_100 {dimension_numbers = #tpu.dot_dimension_numbers<[1], [0], [0], [1], [0, 0, 1, 1], [], []>} : vector<8x16xf32>, vector<16x128xf32>, vector<8x128xf32> -> vector<8x128xf32>
    %278 = vector.broadcast %276 : vector<1x128xf32> to vector<8x128xf32>
    %279 = arith.addf %277, %278 : vector<8x128xf32>
    %cst_101 = arith.constant 0.000000e+00 : f32
    %280 = vector.broadcast %cst_101 : f32 to vector<8x128xf32>
    %281 = arith.maximumf %279, %280 : vector<8x128xf32>
    %282 = vector.extract_strided_slice %281 {offsets = [0, 0], sizes = [8, 32], strides = [1, 1]} : vector<8x128xf32> to vector<8x32xf32>
    %283 = vector.extract_strided_slice %246 {offsets = [16, 0], sizes = [32, 128], strides = [1, 1]} : vector<88x128xf32> to vector<32x128xf32>
    %284 = vector.extract_strided_slice %246 {offsets = [81, 0], sizes = [1, 128], strides = [1, 1]} : vector<88x128xf32> to vector<1x128xf32>
    %cst_102 = arith.constant dense<0.000000e+00> : vector<8x128xf32>
    %285 = tpu.matmul %282, %283, %cst_102 {dimension_numbers = #tpu.dot_dimension_numbers<[1], [0], [0], [1], [0, 0, 1, 1], [], []>} : vector<8x32xf32>, vector<32x128xf32>, vector<8x128xf32> -> vector<8x128xf32>
    %286 = vector.broadcast %284 : vector<1x128xf32> to vector<8x128xf32>
    %287 = arith.addf %285, %286 : vector<8x128xf32>
    %cst_103 = arith.constant 0.000000e+00 : f32
    %288 = vector.broadcast %cst_103 : f32 to vector<8x128xf32>
    %289 = arith.maximumf %287, %288 : vector<8x128xf32>
    %290 = vector.extract_strided_slice %289 {offsets = [0, 0], sizes = [8, 32], strides = [1, 1]} : vector<8x128xf32> to vector<8x32xf32>
    %291 = vector.extract_strided_slice %246 {offsets = [48, 0], sizes = [32, 128], strides = [1, 1]} : vector<88x128xf32> to vector<32x128xf32>
    %292 = vector.extract_strided_slice %246 {offsets = [82, 0], sizes = [1, 128], strides = [1, 1]} : vector<88x128xf32> to vector<1x128xf32>
    %cst_104 = arith.constant dense<0.000000e+00> : vector<8x128xf32>
    %293 = tpu.matmul %290, %291, %cst_104 {dimension_numbers = #tpu.dot_dimension_numbers<[1], [0], [0], [1], [0, 0, 1, 1], [], []>} : vector<8x32xf32>, vector<32x128xf32>, vector<8x128xf32> -> vector<8x128xf32>
    %294 = vector.broadcast %292 : vector<1x128xf32> to vector<8x128xf32>
    %295 = arith.addf %293, %294 : vector<8x128xf32>
    %296 = tpu.iota {dimensions = array<i32: 1>} : vector<8x128xi32>
    %c8_i32_105 = arith.constant 8 : i32
    %297 = vector.broadcast %c8_i32_105 : i32 to vector<8x128xi32>
    %298 = arith.cmpi slt, %296, %297 : vector<8x128xi32>
    %cst_106 = arith.constant -1.000000e+30 : f32
    %299 = vector.broadcast %cst_106 : f32 to vector<8x128xf32>
    %300 = arith.select %298, %295, %299 : vector<8x128xi1>, vector<8x128xf32>
    %cst_107 = arith.constant dense<0xFF800000> : vector<8xf32>
    %301 = vector.multi_reduction <maximumf>, %300, %cst_107 [1] : vector<8x128xf32> to vector<8xf32>
    %302 = vector.shape_cast %301 : vector<8xf32> to vector<8x1xf32>
    %303 = vector.broadcast %302 : vector<8x1xf32> to vector<8x128xf32>
    %304 = arith.subf %300, %303 : vector<8x128xf32>
    %305 = math.exp %304 : vector<8x128xf32>
    %cst_108 = arith.constant dense<0.000000e+00> : vector<8xf32>
    %306 = vector.multi_reduction <add>, %305, %cst_108 [1] : vector<8x128xf32> to vector<8xf32>
    %307 = vector.shape_cast %306 : vector<8xf32> to vector<8x1xf32>
    %308 = tpu.reciprocal %307 {approx = true} : vector<8x1xf32> -> vector<8x1xf32>
    %309 = arith.mulf %307, %308 : vector<8x1xf32>
    %cst_109 = arith.constant 2.000000e+00 : f32
    %310 = vector.broadcast %cst_109 : f32 to vector<8x1xf32>
    %311 = arith.subf %310, %309 : vector<8x1xf32>
    %312 = arith.mulf %308, %311 : vector<8x1xf32>
    %313 = vector.broadcast %312 : vector<8x1xf32> to vector<8x128xf32>
    %314 = arith.mulf %305, %313 : vector<8x128xf32>
    %c3_110 = arith.constant 3 : index
    %c0_111 = arith.constant 0 : index
    %c0_112 = arith.constant 0 : index
    %315 = vector.load %arg3[%c3_110, %c0_111, %c0_112] : memref<4x8x128xf32, #tpu.memory_space<vmem>>, vector<1x8x128xf32>
    %316 = vector.shape_cast %315 : vector<1x8x128xf32> to vector<8x128xf32>
    %317 = vector.shape_cast %314 : vector<8x128xf32> to vector<1x8x128xf32>
    tpu.vector_store %arg3[%c3_110, %c0_111, %c0_112], %317 {strides = array<i32>} : memref<4x8x128xf32, #tpu.memory_space<vmem>>, vector<1x8x128xf32>,
    return
  }
}

</mosaic_0001>

<bundles_post_ra>
// kernel: forward.1
= control target key start
LH: loop header
LB: loop body
LE: loop exit
PB: predicated region body
PF: predicated region fallthrough
CT: control target
= control target key end

     0   :  { %11 = vsyncpa [#allocation3], 0  ;;  %s3829_s0 = inlined_call_operand.hbm [shape: f32[8,16], index: 0, kind: input, shape index: {}]   ;;  %s3830_s1 = inlined_call_operand.hbm [shape: f32[2,88,128], index: 1, kind: input, shape index: {}]   ;;  %s3831_s2 = inlined_call_operand.hbm [shape: f32[4,88,128], index: 2, kind: input, shape index: {}]   ;;  %s3832_s3 = inlined_call_operand.hbm [shape: f32[4,8,128], index: 3, kind: output, shape index: {0}]   ;;  %s3833_s4 = inlined_call_operand.hbm [shape: f32[4], index: 4, kind: output, shape index: {1}]   ;;  %s3834_s5 = inlined_call_operand.hbm [shape: f32[4], index: 5, kind: output, shape index: {2}]  }
   0x1   :  { %12 = vsyncpa [#allocation7], 0 }
   0x2   :  { %13 = vsyncpa [#allocation4], 0 }
   0x3   :  { %14 = vsyncpa [#allocation5], 0 }
   0x4   :  { %15 = vsyncpa [#allocation12], 0  ;;  %s2730_s18 = smov [#allocation6]   ;;  %s2612_s22 = scalar_lea.hbm %s3830_s1, 2816 }
   0x5   :  { %s31_s19 = sshll.u32 %s2730_s18, 4  ;;  %p2613_p0 = scmp.ne.s32.totalorder %s3830_s1, %s2612_s22  ;;  %s32_s19 = int_to_ptr.vmem [resolvable:$true] %s31_s19 }
   0x6   :  { %p2616_p1 = scmp.lt.u32.totalorder %s2612_s22, %s3830_s1 }
   0x8   :  { %p2618_p2 = pnand %p2616_p1, %p2613_p0 }
   0xa   :  { %2621 = shalt.err (!%p2618_p2)
}
   0xb   :  { %s2622_s27 = scalar_lea.vmem %s32_s19, 2816  ;;  %p2627_p4 = scmp.lt.s32.totalorder %s32_s19, %s32_s19 }
   0xc   :  { %p2623_p3 = scmp.ne.s32.totalorder %s32_s19, %s2622_s27  ;;  %p2628_p5 = scmp.lt.s32.totalorder %s2622_s27, %s2622_s27 }
   0xe   :  { %p2629_p6 = por %p2628_p5, %p2627_p4 }
  0x10   :  { %p2630_p7 = pnand %p2629_p6, %p2623_p3 }
  0x12   :  { %2633 = shalt.err (!%p2630_p7)
}
  0x13   :  { %s2731_s28 = smov 128   ;;  %s2732_s29 = smov 8  }
  0x14   :  { %37 = dma.hbm_to_vmem [thread:$0]  %s3830_s1, 2816, %s32_s19, [#allocation7], %s2731_s28, %s2731_s28, %s2732_s29  }
  0x15   :  { %s2733_s7 = smov [#allocation2]   ;;  %s2734_s9 = smov [#allocation8]  }
  0x16   :  { %s22_s8 = sshll.u32 %s2733_s7, 4  ;;  %s43_s10 = sshll.u32 %s2734_s9, 4  ;;  %s23_s8 = int_to_ptr.vmem [resolvable:$true] %s22_s8  ;;  %s44_s10 = int_to_ptr.vmem [resolvable:$true] %s43_s10 }
  0x17   :  { %s2634_s13 = scalar_lea.hbm %s3829_s0, 128 }
  0x18   :  { %p2635_p8 = scmp.ne.s32.totalorder %s3829_s0, %s2634_s13  ;;  %p2638_p9 = scmp.lt.u32.totalorder %s2634_s13, %s3829_s0 }
  0x1a   :  { %p2640_p10 = pnand %p2638_p9, %p2635_p8 }
  0x1c   :  { %2643 = shalt.err (!%p2640_p10)
}
  0x1d   :  { %s2644_s1 = scalar_lea.vmem %s23_s8, 128  ;;  %p2649_p12 = scmp.lt.s32.totalorder %s23_s8, %s23_s8 }
  0x1e   :  { %p2645_p11 = scmp.ne.s32.totalorder %s23_s8, %s2644_s1  ;;  %p2650_p13 = scmp.lt.s32.totalorder %s2644_s1, %s2644_s1 }
  0x20   :  { %p2651_p0 = por %p2650_p13, %p2649_p12 }
  0x22   :  { %p2652_p1 = pnand %p2651_p0, %p2645_p11 }
  0x24   :  { %2655 = shalt.err (!%p2652_p1)
}
  0x25   :  { %25 = dma.hbm_to_vmem [thread:$0]  %s3829_s0, 128, %s23_s8, [#allocation3]  }
  0x26   :  { %s2656_s22 = scalar_lea.hbm %s3831_s2, 5632 }
  0x27   :  { %p2657_p2 = scmp.ne.s32.totalorder %s3831_s2, %s2656_s22  ;;  %p2660_p3 = scmp.lt.u32.totalorder %s2656_s22, %s3831_s2 }
  0x29   :  { %p2662_p4 = pnand %p2660_p3, %p2657_p2 }
  0x2b   :  { %2665 = shalt.err (!%p2662_p4)
}
  0x2c   :  { %s2666_s27 = scalar_lea.vmem %s44_s10, 5632  ;;  %p2671_p6 = scmp.lt.s32.totalorder %s44_s10, %s44_s10 }
  0x2d   :  { %p2667_p5 = scmp.ne.s32.totalorder %s44_s10, %s2666_s27  ;;  %p2672_p7 = scmp.lt.s32.totalorder %s2666_s27, %s2666_s27 }
  0x2f   :  { %p2673_p8 = por %p2672_p7, %p2671_p6 }
  0x31   :  { %p2674_p9 = pnand %p2673_p8, %p2667_p5 }
  0x33   :  { %2677 = shalt.err (!%p2674_p9)
}
  0x34   :  { %49 = dma.hbm_to_vmem [thread:$0]  %s3831_s2, 5632, %s44_s10, [#allocation7], %s2731_s28, %s2731_s28, %s2732_s29  }
  0x35   :  { %2720 = dma.done.wait [#allocation3], 128  }
  0x36   :  { %2721 = vsyncadd [#allocation3], 4294967168 }
  0x37   :  { %2722 = dma.done.wait [#allocation7], 8448  }
  0x38   :  { %2723 = vsyncadd [#allocation7], 4294958848  ;;  %v3843_v0 = vmov 0.0|0.0   ;;  %vm2736_vm0 = vmmov 0   ;;  %v3836_v1 = vmov 0.0   ;;  %v71_v2 = vld [vmem:[#allocation6 + $0x58] sm:$0xff] }
  0x39   :  { %2255 = vmatprep.subr.bf16.mxu0 %v3843_v0  ;;  %2143 = vmatprep.mubr.msk.f32.mxu0 %vm2736_vm0, %v3836_v1  ;;  %v72_v3 = vld [vmem:[#allocation6 + $0x60] sm:$0xff]  ;;  %v82_v4 = vmul.f32 1.442695, %v71_v2  ;;  %v73_v6 = vld [vmem:[#allocation6 + $0x68] sm:$0xff]  ;;  %v74_v7 = vld [vmem:[#allocation6 + $0x70] sm:$0xff]  ;;  %vm416_vm1 = vcmask 130048  }
  0x3a   :  { %2258 = vmatprep.subr.bf16.mxu1 %v3843_v0  ;;  %2154 = vmatprep.mubr.msk.f32.mxu1 %vm2736_vm0, %v3836_v1  ;;  %v84_v5 = vmul.f32 1.442695, %v72_v3  ;;  %v86_v8 = vmul.f32 1.442695, %v73_v6  ;;  %v88_v9 = vmul.f32 1.442695, %v74_v7 }
  0x3b   :  { %2344 = vpow2.f32 %v82_v4  ;;  %v201_v23 = vld [vmem:[#allocation8] sm:$0xff]  ;;  %v202_v27 = vld [vmem:[#allocation8 + $0x8] sm:$0xff]  ;;  %v2821_v29 = vld [vmem:[#allocation6] sm:$0xff]  ;;  %vm495_vm2 = vcmask 261120   ;;  %s2678_s0 = scalar_lea.hbm %s3833_s4, 16 }
  0x3c   :  { %2346 = vpow2.f32 %v84_v5  ;;  %v2825_v33 = vld [vmem:[#allocation6 + $0x8] sm:$0xff]  ;;  %v203_v37 = vld [vmem:[#allocation8 + $0x10] sm:$0xff]  ;;  %v2841_v50 = vld [vmem:[#allocation6 + $0x10] sm:$0xff]  ;;  %p2679_p10 = scmp.ne.s32.totalorder %s3833_s4, %s2678_s0  ;;  %p2682_p11 = scmp.lt.u32.totalorder %s2678_s0, %s3833_s4 }
  0x3d   :  { %2348 = vpow2.f32 %v86_v8  ;;  %v204_v42 = vld [vmem:[#allocation8 + $0x18] sm:$0xff]  ;;  %v2843_v51 = vld [vmem:[#allocation6 + $0x18] sm:$0xff] }
  0x3e   :  { %2350 = vpow2.f32 %v88_v9  ;;  %v2851_v5 = vld [vmem:[#allocation2] sm:$0xff]  ;;  %p2684_p12 = pnand %p2682_p11, %p2679_p10 }
  0x45   :  { %v2345_v10 = vpop.eup %2344 }
  0x46   :  { %v2347_v11 = vpop.eup %2346  ;;  %v104_v12 = vadd.f32 1.0, %v2345_v10  ;;  %2352 = vrcp.f32 %v2345_v10 }
  0x47   :  { %v105_v13 = vadd.f32 1.0, %v2347_v11  ;;  %2354 = vrcp.f32 %v2347_v11  ;;  %v2349_v14 = vpop.eup %2348 }
  0x48   :  { %2356 = vlog2.f32 %v104_v12  ;;  %v2351_v15 = vpop.eup %2350  ;;  %v106_v16 = vadd.f32 1.0, %v2349_v14 }
  0x49   :  { %2358 = vlog2.f32 %v105_v13  ;;  %v107_v17 = vadd.f32 1.0, %v2351_v15 }
  0x4a   :  { %2360 = vrcp.f32 %v2349_v14 }
  0x4b   :  { %2362 = vlog2.f32 %v106_v16 }
  0x4c   :  { %2364 = vlog2.f32 %v107_v17 }
  0x4d   :  { %2366 = vrcp.f32 %v2351_v15 }
  0x50   :  { %v2353_v18 = vpop.eup %2352 }
  0x51   :  { %v2355_v19 = vpop.eup %2354  ;;  %v148_v20 = vmul.f32 %v2353_v18, %v2345_v10 }
  0x52   :  { %v2357_v21 = vpop.eup %2356  ;;  %v149_v22 = vmul.f32 %v2355_v19, %v2347_v11 }
  0x53   :  { %v2359_v24 = vpop.eup %2358  ;;  %v2819_v25 = vmul.f32 0.6931472, %v2357_v21  ;;  %v159_v26 = vsub.f32 2.0, %v148_v20 }
  0x54   :  { %v2361_v28 = vpop.eup %2360  ;;  %v2823_v30 = vmul.f32 0.6931472, %v2359_v24  ;;  %v160_v31 = vsub.f32 2.0, %v149_v22 }
  0x55   :  { %v2363_v32 = vpop.eup %2362  ;;  %v2827_v34 = vmul.f32 %v2353_v18, %v159_v26  ;;  %v212_v35 = vmul.f32 %v201_v23, %v2819_v25  ;;  %v150_v36 = vmul.f32 %v2361_v28, %v2349_v14 }
  0x56   :  { %v2365_v38 = vpop.eup %2364  ;;  %v2830_v39 = vmul.f32 %v2355_v19, %v160_v31  ;;  %v213_v40 = vmul.f32 %v202_v27, %v2823_v30  ;;  %v2833_v41 = vmul.f32 0.6931472, %v2363_v32 }
  0x57   :  { %v2367_v43 = vpop.eup %2366  ;;  %v223_v44 = vadd.f32 %v212_v35, %v2821_v29  ;;  %v234_v45 = vmul.f32 %v212_v35, %v2827_v34  ;;  %v2837_v46 = vmul.f32 0.6931472, %v2365_v38  ;;  %v161_v47 = vsub.f32 2.0, %v150_v36 }
  0x58   :  { %v224_v48 = vadd.f32 %v213_v40, %v2825_v33  ;;  %v235_v49 = vmul.f32 %v213_v40, %v2830_v39  ;;  %v151_v52 = vmul.f32 %v2367_v43, %v2351_v15  ;;  %v214_v53 = vmul.f32 %v203_v37, %v2833_v41 }
  0x59   :  { %v246_v54 = vmul.f32 %v234_v45, %v234_v45  ;;  %v280_v55 = vmul.f32 %v223_v44, %v223_v44  ;;  %v2846_v56 = vmul.f32 %v2361_v28, %v161_v47  ;;  %v215_v57 = vmul.f32 %v204_v42, %v2837_v46 }
  0x5a   :  { %v247_v58 = vmul.f32 %v235_v49, %v235_v49  ;;  %v281_v59 = vmul.f32 %v224_v48, %v224_v48  ;;  %v2256_v60 = vpack.c.bf16 %v224_v48, %v223_v44  ;;  %v162_v61 = vsub.f32 2.0, %v151_v52 }
  0x5b   :  { %v291_v62 = vmul.f32 -7.5, %v280_v55  ;;  %v225_v63 = vadd.f32 %v214_v53, %v2841_v50  ;;  %v226_v2 = vadd.f32 %v215_v57, %v2843_v51  ;;  %v236_v8 = vmul.f32 %v214_v53, %v2846_v56 }
  0x5c   :  { %v257_v3 = vadd.f32 %v247_v58, %v246_v54  ;;  %v292_v4 = vmul.f32 -7.5, %v281_v59  ;;  %2257 = vmatpush3.bf16.msra.mxu0 %v2256_v60  ;;  %v2853_v6 = vmul.f32 %v2367_v43, %v162_v61  ;;  %v368_v40 = vmul.f32 0.5, %v280_v55  ;;  %v75_v55 = vld [vmem:[#allocation6 + $0x78] sm:$0xff] }
  0x5d   :  { %v302_v7 = vmul.f32 1.442695, %v291_v62  ;;  %v282_v9 = vmul.f32 %v225_v63, %v225_v63  ;;  %v283_v10 = vmul.f32 %v226_v2, %v226_v2  ;;  %2264 = vmatprep.subr.bf16.mxu0 %v3843_v0  ;;  %v2259_v13 = vpack.c.bf16 %v226_v2, %v225_v63 }
  0x5e   :  { %v304_v11 = vmul.f32 1.442695, %v292_v4  ;;  %v237_v12 = vmul.f32 %v215_v57, %v2853_v6  ;;  %v248_v14 = vmul.f32 %v236_v8, %v236_v8  ;;  %v369_v43 = vmul.f32 0.5, %v281_v59  ;;  %v76_v4 = vld [vmem:[#allocation6 + $0x80] sm:$0xff] }
  0x5f   :  { %2368 = vpow2.f32 %v302_v7  ;;  %2144 = vmatmul.mubr.msk.f32.vlgmr.msra.gmra.mrb[0].mxu0 %vm416_vm1, %v2851_v5  ;;  %v293_v15 = vmul.f32 -7.5, %v282_v9  ;;  %v294_v16 = vmul.f32 -7.5, %v283_v10  ;;  %2260 = vmatpush3.bf16.msra.mxu1 %v2259_v13  ;;  %v370_v49 = vmul.f32 0.5, %v282_v9 }
  0x60   :  { %2370 = vpow2.f32 %v304_v11  ;;  %v249_v17 = vmul.f32 %v237_v12, %v237_v12  ;;  %2165 = vmatprep.mubr.msk.f32.mxu0 %vm2736_vm0, %v3836_v1  ;;  %v258_v18 = vadd.f32 %v257_v3, %v248_v14  ;;  %2261 = vmatprep.subr.bf16.mxu1 %v3843_v0  ;;  %v371_v54 = vmul.f32 0.5, %v283_v10 }
  0x61   :  { %v306_v19 = vmul.f32 1.442695, %v293_v15  ;;  %v308_v20 = vmul.f32 1.442695, %v294_v16  ;;  %v90_v59 = vmul.f32 1.442695, %v75_v55 }
  0x62   :  { %v2863_v21 = vadd.f32 %v258_v18, %v249_v17  ;;  %v92_v7 = vmul.f32 1.442695, %v76_v4  ;;  %v205_v16 = vld [vmem:[#allocation8 + $0x20] sm:$0xff]  ;;  %v206_v17 = vld [vmem:[#allocation8 + $0x28] sm:$0xff] }
  0x63   :  { %2372 = vpow2.f32 %v306_v19  ;;  %v2872_v19 = vld [vmem:[#allocation6 + $0x20] sm:$0xff] }
  0x64   :  { %2374 = vpow2.f32 %v308_v20  ;;  %v2874_v20 = vld [vmem:[#allocation6 + $0x28] sm:$0xff] }
  0x69   :  { %v2369_v22 = vpop.eup %2368 }
  0x6a   :  { %v2371_v23 = vpop.eup %2370  ;;  %v324_v24 = vmul.f32 0.8, %v2369_v22 }
  0x6b   :  { %v325_v26 = vmul.f32 0.8, %v2371_v23 }
  0x6c   :  { %v335_v27 = vadd.f32 0.2, %v324_v24 }
  0x6d   :  { %v2373_v28 = vpop.eup %2372  ;;  %v336_v31 = vadd.f32 0.2, %v325_v26 }
  0x6e   :  { %v2375_v32 = vpop.eup %2374  ;;  %2376 = vlog2.f32 %v335_v27  ;;  %v326_v35 = vmul.f32 0.8, %v2373_v28  ;;  %v665_v27 = vld [vmem:[#allocation8 + $0x58] sm:$0xff]  ;;  %v666_v28 = vld [vmem:[#allocation8 + $0x60] sm:$0xff] }
  0x6f   :  { %2378 = vlog2.f32 %v336_v31  ;;  %v327_v36 = vmul.f32 0.8, %v2375_v32  ;;  %v676_v31 = vmul.f32 %v665_v27, %v2819_v25  ;;  %v677_v32 = vmul.f32 %v666_v28, %v2823_v30 }
  0x70   :  { %v337_v37 = vadd.f32 0.2, %v326_v35 }
  0x71   :  { %v338_v38 = vadd.f32 0.2, %v327_v36  ;;  %v2889_v35 = vadd.f32 %v676_v31, %v2821_v29  ;;  %v2892_v36 = vadd.f32 %v677_v32, %v2825_v33 }
  0x72   :  { %2380 = vlog2.f32 %v337_v37  ;;  %v698_v37 = vmul.f32 %v676_v31, %v2827_v34 }
  0x73   :  { %2382 = vlog2.f32 %v338_v38  ;;  %v699_v38 = vmul.f32 %v677_v32, %v2830_v39 }
  0x74   :  { %2384 = vpow2.f32 %v90_v59 }
  0x75   :  { %2386 = vpow2.f32 %v92_v7 }
  0x78   :  { %v2377_v42 = vpop.eup %2376 }
  0x79   :  { %v2379_v44 = vpop.eup %2378  ;;  %v347_v45 = vmul.f32 0.6931472, %v2377_v42  ;;  %v744_v42 = vmul.f32 %v2892_v36, %v2892_v36 }
  0x7a   :  { %v349_v47 = vmul.f32 0.6931472, %v2379_v44  ;;  %v710_v44 = vmul.f32 %v699_v38, %v699_v38 }
  0x7b   :  { %v379_v48 = vsub.f32 %v347_v45, %v368_v40  ;;  %v743_v40 = vmul.f32 %v2889_v35, %v2889_v35 }
  0x7c   :  { %v2381_v52 = vpop.eup %2380  ;;  %v380_v53 = vsub.f32 %v349_v47, %v369_v43  ;;  %v709_v43 = vmul.f32 %v698_v37, %v698_v37  ;;  %v755_v47 = vmul.f32 -7.5, %v744_v42  ;;  %v832_v37 = vmul.f32 0.5, %v744_v42 }
  0x7d   :  { %v2383_v57 = vpop.eup %2382  ;;  %v351_v58 = vmul.f32 0.6931472, %v2381_v52  ;;  %v754_v45 = vmul.f32 -7.5, %v743_v40 }
  0x7e   :  { %v390_v60 = vadd.f32 %v380_v53, %v379_v48  ;;  %v353_v61 = vmul.f32 0.6931472, %v2383_v57  ;;  %v2385_v8 = vpop.eup %2384  ;;  %v2900_v48 = vld [vmem:[#allocation6 + $0x88] sm:$0xff]  ;;  %v767_v53 = vmul.f32 1.442695, %v755_v47 }
  0x7f   :  { %v381_v62 = vsub.f32 %v351_v58, %v370_v49  ;;  %v2387_v9 = vpop.eup %2386  ;;  %v108_v11 = vadd.f32 1.0, %v2385_v8  ;;  %3909 = vst [vmem:[#allocation19_spill] sm:$0xff] %v2900_v48  ;;  %v2902_v49 = vadd.f32 %v710_v44, %v709_v43  ;;  %v765_v52 = vmul.f32 1.442695, %v754_v45  ;;  %v207_v45 = vld [vmem:[#allocation8 + $0x30] sm:$0xff] }
  0x80   :  { %v382_v63 = vsub.f32 %v353_v61, %v371_v54  ;;  %v109_v12 = vadd.f32 1.0, %v2387_v9  ;;  %v78_v54 = vld [vmem:[#allocation6 + $0x90] sm:$0xff]  ;;  %v94_v57 = vmul.f32 1.442695, %v2900_v48 }
  0x81   :  { %v391_v2 = vadd.f32 %v390_v60, %v381_v62  ;;  %2388 = vlog2.f32 %v108_v11  ;;  %v96_v58 = vmul.f32 1.442695, %v78_v54  ;;  %v208_v54 = vld [vmem:[#allocation8 + $0x38] sm:$0xff] }
  0x82   :  { %2390 = vlog2.f32 %v109_v12 }
  0x83   :  { %v2865_v3 = vadd.f32 %v391_v2, %v382_v63  ;;  %2392 = vrcp.f32 %v2385_v8 }
  0x84   :  { %2394 = vrcp.f32 %v2387_v9 }
  0x85   :  { %3908 = vst [vmem:[#allocation18_spill] sm:$0xff] %v2865_v3  ;;  %2396 = vpow2.f32 %v765_v52 }
  0x86   :  { %2398 = vpow2.f32 %v767_v53 }
  0x87   :  { %2400 = vpow2.f32 %v94_v57 }
  0x88   :  { %2402 = vpow2.f32 %v96_v58  ;;  %v2924_v58 = vld [vmem:[#allocation6 + $0x30] sm:$0xff] }
  0x8b   :  { %v2389_v10 = vpop.eup %2388 }
  0x8c   :  { %v2391_v13 = vpop.eup %2390  ;;  %v2867_v14 = vmul.f32 0.6931472, %v2389_v10 }
  0x8d   :  { %v2869_v15 = vmul.f32 0.6931472, %v2391_v13  ;;  %v2393_v60 = vpop.eup %2392 }
  0x8e   :  { %v216_v18 = vmul.f32 %v205_v16, %v2867_v14  ;;  %v2395_v61 = vpop.eup %2394  ;;  %v152_v62 = vmul.f32 %v2393_v60, %v2385_v8 }
  0x8f   :  { %v217_v22 = vmul.f32 %v206_v17, %v2869_v15  ;;  %v153_v63 = vmul.f32 %v2395_v61, %v2387_v9  ;;  %v2397_v12 = vpop.eup %2396 }
  0x90   :  { %v2878_v23 = vadd.f32 %v216_v18, %v2872_v19  ;;  %v163_v2 = vsub.f32 2.0, %v152_v62  ;;  %v2399_v13 = vpop.eup %2398  ;;  %v787_v16 = vmul.f32 0.8, %v2397_v12 }
  0x91   :  { %v2881_v24 = vadd.f32 %v217_v22, %v2874_v20  ;;  %v164_v55 = vsub.f32 2.0, %v153_v63  ;;  %v2913_v17 = vpop.eup %2400  ;;  %v788_v9 = vmul.f32 0.8, %v2399_v13 }
  0x92   :  { %v2905_v4 = vmul.f32 %v2393_v60, %v163_v2  ;;  %3911 = vst [vmem:[#allocation21_spill] sm:$0xff] %v2913_v17  ;;  %v798_v27 = vadd.f32 0.2, %v787_v16  ;;  %v110_v28 = vadd.f32 1.0, %v2913_v17 }
  0x93   :  { %v2262_v26 = vpack.c.bf16 %v2881_v24, %v2878_v23  ;;  %v2907_v59 = vmul.f32 %v2395_v61, %v164_v55  ;;  %v799_v31 = vadd.f32 0.2, %v788_v9  ;;  %v2928_v61 = vld [vmem:[#allocation6 + $0x38] sm:$0xff] }
  0x94   :  { %v238_v7 = vmul.f32 %v216_v18, %v2905_v4  ;;  %2404 = vlog2.f32 %v798_v27  ;;  %v3835_v27 = vlaneseq }
  0x95   :  { %2263 = vmatpush3.bf16.msra.mxu1 %v2262_v26  ;;  %v2911_v11 = vmul.f32 %v217_v22, %v2907_v59  ;;  %v2918_v26 = vpop.eup %2402  ;;  %2406 = vlog2.f32 %v799_v31  ;;  %v831_v22 = vmul.f32 0.5, %v743_v40 }
  0x96   :  { %2270 = vmatprep.subr.bf16.mxu1 %v3843_v0  ;;  %v250_v10 = vmul.f32 %v238_v7, %v238_v7  ;;  %3913 = vst [vmem:[#allocation23_spill] sm:$0xff] %v2918_v26  ;;  %v111_v18 = vadd.f32 1.0, %v2918_v26  ;;  %2408 = vlog2.f32 %v110_v28  ;;  %v81_v7 = vld [vmem:[#allocation6 + $0xa8] sm:$0xff]  ;;  %v211_v28 = vld [vmem:[#allocation8 + $0x50] sm:$0xff] }
  0x97   :  { %3910 = vst [vmem:[#allocation20_spill] sm:$0xff] %v2911_v11  ;;  %v102_v12 = vmul.f32 1.442695, %v81_v7 }
  0x98   :  { %v2916_v8 = vadd.f32 %v2863_v21, %v250_v10  ;;  %2410 = vlog2.f32 %v111_v18  ;;  %v2958_v18 = vshrl.u32 %v3835_v27, 7  ;;  %v669_v27 = vld [vmem:[#allocation8 + $0x78] sm:$0xff] }
  0x99   :  { %2412 = vpow2.f32 %v102_v12 }
  0x9a   :  { %3912 = vst [vmem:[#allocation22_spill] sm:$0xff] %v2916_v8 }
  0x9e   :  { %v2405_v32 = vpop.eup %2404 }
  0x9f   :  { %v2407_v38 = vpop.eup %2406  ;;  %v810_v43 = vmul.f32 0.6931472, %v2405_v32 }
  0xa0   :  { %v2409_v21 = vpop.eup %2408  ;;  %v812_v44 = vmul.f32 0.6931472, %v2407_v38 }
  0xa1   :  { %v842_v52 = vsub.f32 %v810_v43, %v831_v22  ;;  %v2922_v53 = vmul.f32 0.6931472, %v2409_v21  ;;  %v2960_v22 = vld [vmem:[#allocation6 + $0x50] sm:$0xff] }
  0xa2   :  { %v2411_v47 = vpop.eup %2410  ;;  %v843_v57 = vsub.f32 %v812_v44, %v832_v37  ;;  %v2967_v37 = vsub.s32 0, %v2958_v18 }
  0xa3   :  { %v2926_v60 = vmul.f32 0.6931472, %v2411_v47  ;;  %v2931_v40 = vmul.f32 %v207_v45, %v2922_v53  ;;  %v2949_v10 = vpop.eup %2412  ;;  %v2271_v45 = vpack.c.bf16 %v2892_v36, %v2889_v35 }
  0xa4   :  { %v2933_v42 = vadd.f32 %v843_v57, %v842_v52  ;;  %3918 = vst [vmem:[#allocation28_spill] sm:$0xff] %v2949_v10  ;;  %v114_v13 = vadd.f32 1.0, %v2949_v10  ;;  %v2981_v52 = vld [vmem:[#allocation6 + $0x98] sm:$0xff]  ;;  %v1122_v10 = vld [vmem:[#allocation8 + $0xb8] sm:$0xff] }
  0xa5   :  { %3914 = vst [vmem:[#allocation24_spill] sm:$0xff] %v2931_v40  ;;  %v2936_v62 = vmul.f32 %v208_v54, %v2926_v60  ;;  %v2940_v63 = vadd.f32 %v2931_v40, %v2924_v58  ;;  %3920 = vst [vmem:[#allocation30_spill] sm:$0xff] %v2981_v52  ;;  %v2983_v54 = vld [vmem:[#allocation6 + $0xa0] sm:$0xff]  ;;  %v98_v35 = vmul.f32 1.442695, %v2981_v52 }
  0xa6   :  { %3915 = vst [vmem:[#allocation25_spill] sm:$0xff] %v2933_v42  ;;  %2414 = vlog2.f32 %v114_v13  ;;  %3921 = vst [vmem:[#allocation31_spill] sm:$0xff] %v2983_v54  ;;  %v100_v36 = vmul.f32 1.442695, %v2983_v54 }
  0xa7   :  { %3916 = vst [vmem:[#allocation26_spill] sm:$0xff] %v2936_v62  ;;  %v2944_v2 = vadd.f32 %v2936_v62, %v2928_v61  ;;  %2416 = vpow2.f32 %v98_v35 }
  0xa8   :  { %2418 = vpow2.f32 %v100_v36 }
  0xa9   :  { %3917 = vst [vmem:[#allocation27_spill] sm:$0xff] %v2944_v2  ;;  %v2265_v55 = vpack.c.bf16 %v2944_v2, %v2940_v63 }
  0xab   :  { %2266 = vmatpush3.bf16.msra.mxu0 %v2265_v55 }
  0xac   :  { %2267 = vmatprep.subr.bf16.mxu0 %v3843_v0 }
  0xb0   :  { %v2415_v16 = vpop.eup %2414 }
  0xb1   :  { %v2952_v9 = vmul.f32 0.6931472, %v2415_v16  ;;  %v2987_v57 = vpop.eup %2416 }
  0xb2   :  { %3922 = vst [vmem:[#allocation32_spill] sm:$0xff] %v2987_v57  ;;  %v2989_v55 = vpop.eup %2418  ;;  %v112_v7 = vadd.f32 1.0, %v2987_v57  ;;  %v1133_v57 = vmul.f32 %v1122_v10, %v2823_v30 }
  0xb3   :  { %v2955_v31 = vmul.f32 %v211_v28, %v2952_v9  ;;  %3923 = vst [vmem:[#allocation33_spill] sm:$0xff] %v2989_v55  ;;  %v113_v12 = vadd.f32 1.0, %v2989_v55 }
  0xb4   :  { %2420 = vlog2.f32 %v112_v7  ;;  %v1155_v26 = vmul.f32 %v1133_v57, %v2830_v39 }
  0xb5   :  { %3919 = vst [vmem:[#allocation29_spill] sm:$0xff] %v2955_v31  ;;  %v2964_v32 = vadd.f32 %v2955_v31, %v2960_v22  ;;  %2422 = vlog2.f32 %v113_v12 }
  0xb7   :  { %v415_v38 = vrot.slane %v2964_v32, %v2967_v37 }
  0xbe   :  { %v2421_v13 = vpop.eup %2420 }
  0xbf   :  { %v2423_v16 = vpop.eup %2422  ;;  %v2993_v28 = vmul.f32 0.6931472, %v2421_v13  ;;  %v667_v13 = vld [vmem:[#allocation8 + $0x68] sm:$0xff] }
 0x132   :  { %v486_v43 = vpop.f32.mrb[0].mxu0 }
 0x133   :  { %v487_v21 = vadd.f32 %v486_v43, %v415_v38  ;;  %v2145_v44 = vpop.f32.mrb[1].mxu0  ;;  %v2995_v38 = vmul.f32 0.6931472, %v2423_v16  ;;  %v209_v43 = vld [vmem:[#allocation8 + $0x40] sm:$0xff]  ;;  %v668_v16 = vld [vmem:[#allocation8 + $0x70] sm:$0xff] }
 0x134   :  { %v2998_v44 = vmul.f32 %v209_v43, %v2993_v28  ;;  %v678_v43 = vmul.f32 %v667_v13, %v2833_v41 }
 0x135   :  { %v490_v47 = vmax.f32 %v487_v21, 0.0  ;;  %v210_v21 = vld [vmem:[#allocation8 + $0x48] sm:$0xff] }
 0x136   :  { %3924 = vst [vmem:[#allocation34_spill] sm:$0xff] %v2998_v44  ;;  %v3005_v35 = vmul.f32 %v210_v21, %v2995_v38  ;;  %v679_v21 = vmul.f32 %v668_v16, %v2837_v46  ;;  %v700_v31 = vmul.f32 %v678_v43, %v2846_v56  ;;  %v1121_v16 = vld [vmem:[#allocation8 + $0xb0] sm:$0xff] }
 0x137   :  { %2155 = vmatmul.mubr.msk.f32.vlgmr.msra.gmra.mrb[0].mxu1 %vm495_vm2, %v490_v47  ;;  %v3002_v47 = vld [vmem:[#allocation6 + $0x48] sm:$0xff]  ;;  %v1132_v55 = vmul.f32 %v1121_v16, %v2819_v25 }
 0x138   :  { %2272 = vmatpush3.bf16.msra.mxu1 %v2271_v45  ;;  %2172 = vmatprep.mubr.msk.f32.mxu1 %vm2736_vm0, %v3836_v1  ;;  %v3000_v45 = vld [vmem:[#allocation6 + $0x40] sm:$0xff]  ;;  %3925 = vst [vmem:[#allocation35_spill] sm:$0xff] %v3005_v35  ;;  %v3013_v7 = vadd.f32 %v3005_v35, %v3002_v47  ;;  %v680_v35 = vmul.f32 %v669_v27, %v2867_v14 }
 0x139   :  { %2279 = vmatprep.subr.bf16.mxu1 %v3843_v0  ;;  %v3009_v36 = vadd.f32 %v2998_v44, %v3000_v45  ;;  %v3022_v44 = vmul.f32 %v679_v21, %v2853_v6  ;;  %v711_v62 = vmul.f32 %v700_v31, %v700_v31  ;;  %v1143_v27 = vadd.f32 %v1132_v55, %v2821_v29 }
 0x13a   :  { %3927 = vst [vmem:[#allocation37_spill] sm:$0xff] %v3013_v7  ;;  %v1144_v31 = vadd.f32 %v1133_v57, %v2825_v33 }
 0x13b   :  { %2173 = vmatmul.mubr.msk.f32.vlgmr.msra.gmra.mrb[2].mxu1 %vm416_vm1, %v2851_v5  ;;  %3926 = vst [vmem:[#allocation36_spill] sm:$0xff] %v3009_v36  ;;  %v2268_v12 = vpack.c.bf16 %v3013_v7, %v3009_v36  ;;  %3928 = vst [vmem:[#allocation38_spill] sm:$0xff] %v3022_v44 }
 0x13c   :  { %2194 = vmatprep.mubr.msk.f32.mxu1 %vm2736_vm0, %v3836_v1  ;;  %v670_v1 = vld [vmem:[#allocation8 + $0x80] sm:$0xff] }
 0x13d   :  { %2269 = vmatpush3.bf16.msra.mxu0 %v2268_v12  ;;  %v681_v40 = vmul.f32 %v670_v1, %v2869_v15  ;;  %v3027_v12 = vmul.f32 %v680_v35, %v2905_v4  ;;  %v1154_v1 = vmul.f32 %v1132_v55, %v2827_v34 }
 0x13e   :  { %2273 = vmatprep.subr.bf16.mxu0 %v3843_v0  ;;  %v3030_v0 = vadd.f32 %v2902_v49, %v711_v62  ;;  %v1199_v49 = vmul.f32 %v1143_v27, %v1143_v27  ;;  %v1200_v62 = vmul.f32 %v1144_v31, %v1144_v31 }
 0x13f   :  { %3929 = vst [vmem:[#allocation39_spill] sm:$0xff] %v3027_v12  ;;  %v3033_v13 = vmul.f32 %v681_v40, %v2907_v59  ;;  %v1165_v17 = vmul.f32 %v1154_v1, %v1154_v1 }
 0x140   :  { %3930 = vst [vmem:[#allocation40_spill] sm:$0xff] %v3030_v0  ;;  %v1166_v0 = vmul.f32 %v1155_v26, %v1155_v26  ;;  %v1210_v8 = vmul.f32 -7.5, %v1199_v49  ;;  %v1287_v57 = vmul.f32 0.5, %v1199_v49  ;;  %v1288_v52 = vmul.f32 0.5, %v1200_v62 }
 0x141   :  { %3931 = vst [vmem:[#allocation41_spill] sm:$0xff] %v3033_v13  ;;  %v1211_v13 = vmul.f32 -7.5, %v1200_v62 }
 0x142   :  { %v3041_v12 = vadd.f32 %v1166_v0, %v1165_v17  ;;  %v1221_v44 = vmul.f32 1.442695, %v1210_v8 }
 0x143   :  { %v1223_v16 = vmul.f32 1.442695, %v1211_v13  ;;  %v3046_v13 = vsub.s32 1, %v2958_v18 }
 0x144   :  { %2424 = vpow2.f32 %v1221_v44  ;;  %v675_v44 = vld [vmem:[#allocation8 + $0xa8] sm:$0xff] }
 0x145   :  { %2426 = vpow2.f32 %v1223_v16  ;;  %3933 = vst [vmem:[#allocation43_spill] sm:$0xff] %v3046_v13 }
 0x14e   :  { %v2425_v10 = vpop.eup %2424 }
 0x14f   :  { %v2427_v11 = vpop.eup %2426  ;;  %v1243_v42 = vmul.f32 0.8, %v2425_v10  ;;  %v3068_v10 = vadd.f32 %v680_v35, %v2872_v19 }
 0x150   :  { %v1244_v3 = vmul.f32 0.8, %v2427_v11  ;;  %v3049_v11 = vmul.f32 %v675_v44, %v2952_v9  ;;  %v2286_v44 = vpack.c.bf16 %v1144_v31, %v1143_v27 }
 0x151   :  { %v1254_v54 = vadd.f32 0.2, %v1243_v42 }
 0x152   :  { %v1255_v55 = vadd.f32 0.2, %v1244_v3  ;;  %3934 = vst [vmem:[#allocation44_spill] sm:$0xff] %v3049_v11  ;;  %v494_v3 = vrot.slane %v2964_v32, %v3046_v13  ;;  %v3055_v42 = vadd.f32 %v3049_v11, %v2960_v22 }
 0x153   :  { %2428 = vlog2.f32 %v1254_v54  ;;  %v3058_v54 = vadd.f32 %v678_v43, %v2841_v50 }
 0x154   :  { %2430 = vlog2.f32 %v1255_v55  ;;  %v878_v62 = vrot.slane %v3055_v42, %v2967_v37  ;;  %v3071_v55 = vadd.f32 %v681_v40, %v2874_v20  ;;  %v671_v40 = vld [vmem:[#allocation8 + $0x88] sm:$0xff] }
 0x155   :  { %v3089_v27 = vmul.f32 %v671_v40, %v2922_v53 }
 0x157   :  { %3937 = vst [vmem:[#allocation45_spill] sm:$0xff] %v3089_v27 }
 0x15d   :  { %v2429_v1 = vpop.eup %2428 }
 0x15e   :  { %v2431_v26 = vpop.eup %2430  ;;  %v1266_v48 = vmul.f32 0.6931472, %v2429_v1 }
 0x15f   :  { %v1268_v7 = vmul.f32 0.6931472, %v2431_v26  ;;  %v2277_v26 = vpack.c.bf16 %v3071_v55, %v3068_v10 }
 0x160   :  { %v1298_v0 = vsub.f32 %v1266_v48, %v1287_v57  ;;  %v3061_v48 = vadd.f32 %v679_v21, %v2843_v51 }
 0x161   :  { %v1299_v17 = vsub.f32 %v1268_v7, %v1288_v52 }
 0x162   :  { %v2274_v16 = vpack.c.bf16 %v3061_v48, %v3058_v54 }
 0x163   :  { %v3043_v8 = vadd.f32 %v1299_v17, %v1298_v0  ;;  %v3935_v0 = vmov 0.0   ;;  %v3936_v17 = vmov 0.0|0.0  }
 0x165   :  { %3932 = vst [vmem:[#allocation42_spill] sm:$0xff] %v3043_v8  ;;  %v1578_v8 = vld [vmem:[#allocation8 + $0x110] sm:$0xff] }
 0x20a   :  { %v565_v52 = vpop.f32.mrb[0].mxu1 }
 0x20b   :  { %v566_v7 = vadd.f32 %v565_v52, %v494_v3  ;;  %v2156_v49 = vpop.f32.mrb[1].mxu1  ;;  %v672_v3 = vld [vmem:[#allocation8 + $0x90] sm:$0xff]  ;;  %v3096_v52 = vadd.f32 %v3089_v27, %v2924_v58 }
 0x20c   :  { %v3092_v31 = vmul.f32 %v672_v3, %v2926_v60  ;;  %v673_v49 = vld [vmem:[#allocation8 + $0x98] sm:$0xff] }
 0x20d   :  { %v569_v43 = vmax.f32 %v566_v7, 0.0  ;;  %3939 = vst [vmem:[#allocation47_spill] sm:$0xff] %v3096_v52 }
 0x20e   :  { %v945_v57 = vpop.f32.mrb[2].mxu1  ;;  %3938 = vst [vmem:[#allocation46_spill] sm:$0xff] %v3092_v31  ;;  %v3100_v7 = vadd.f32 %v3092_v31, %v2928_v61 }
 0x20f   :  { %2166 = vmatmul.mubr.msk.f32.vlgmr.msra.gmra.mrb[2].mxu0 %vm495_vm2, %v569_v43  ;;  %v946_v21 = vadd.f32 %v945_v57, %v878_v62  ;;  %v2174_v1 = vpop.f32.mrb[3].mxu1  ;;  %v674_v62 = vld [vmem:[#allocation8 + $0xa0] sm:$0xff]  ;;  %v3105_v43 = vmul.f32 %v673_v49, %v2993_v28  ;;  %v1125_v49 = vld [vmem:[#allocation8 + $0xd0] sm:$0xff] }
 0x210   :  { %2275 = vmatpush3.bf16.msra.mxu0 %v2274_v16  ;;  %2183 = vmatprep.mubr.msk.f32.mxu0 %vm2736_vm0, %v3935_v0  ;;  %3940 = vst [vmem:[#allocation48_spill] sm:$0xff] %v3100_v7  ;;  %v2280_v16 = vpack.c.bf16 %v3100_v7, %v3096_v52  ;;  %v3108_v57 = vmul.f32 %v674_v62, %v2995_v38  ;;  %v1126_v62 = vld [vmem:[#allocation8 + $0xd8] sm:$0xff] }
 0x211   :  { %2276 = vmatprep.subr.bf16.mxu0 %v3936_v17  ;;  %v949_v35 = vmax.f32 %v946_v21, 0.0  ;;  %3941 = vst [vmem:[#allocation49_spill] sm:$0xff] %v3105_v43  ;;  %v3113_v21 = vadd.f32 %v3105_v43, %v3000_v45  ;;  %v1137_v31 = vmul.f32 %v1126_v62, %v2869_v15 }
 0x212   :  { %3942 = vst [vmem:[#allocation50_spill] sm:$0xff] %v3108_v57  ;;  %2281 = vmatpush3.bf16.msra.mxu1 %v2280_v16  ;;  %v3117_v1 = vadd.f32 %v3108_v57, %v3002_v47  ;;  %v1136_v57 = vmul.f32 %v1125_v49, %v2867_v14 }
 0x213   :  { %2282 = vmatprep.subr.bf16.mxu1 %v3936_v17  ;;  %3943 = vst [vmem:[#allocation51_spill] sm:$0xff] %v3113_v21 }
 0x214   :  { %2278 = vmatpush3.bf16.msra.mxu0 %v2277_v26  ;;  %3944 = vst [vmem:[#allocation52_spill] sm:$0xff] %v3117_v1  ;;  %v2283_v26 = vpack.c.bf16 %v3117_v1, %v3113_v21 }
 0x215   :  { %2285 = vmatprep.subr.bf16.mxu0 %v3936_v17 }
 0x216   :  { %2284 = vmatpush3.bf16.msra.mxu1 %v2283_v26  ;;  %v3131_v26 = vmul.f32 %v1136_v57, %v2905_v4 }
 0x217   :  { %2184 = vmatmul.mubr.msk.f32.vlgmr.msra.gmra.mrb[4].mxu0 %vm495_vm2, %v949_v35  ;;  %v1123_v35 = vld [vmem:[#allocation8 + $0xc0] sm:$0xff]  ;;  %2288 = vmatprep.subr.bf16.mxu1 %v3936_v17 }
 0x218   :  { %2287 = vmatpush3.bf16.msra.mxu0 %v2286_v44  ;;  %2201 = vmatprep.mubr.msk.f32.mxu0 %vm2736_vm0, %v3935_v0  ;;  %v1124_v44 = vld [vmem:[#allocation8 + $0xc8] sm:$0xff]  ;;  %v1134_v40 = vmul.f32 %v1123_v35, %v2833_v41  ;;  %3946 = vst [vmem:[#allocation54_spill] sm:$0xff] %v3131_v26  ;;  %v3137_v35 = vmul.f32 %v1137_v31, %v2907_v59 }
 0x219   :  { %2294 = vmatprep.subr.bf16.mxu0 %v3936_v17  ;;  %v1135_v3 = vmul.f32 %v1124_v44, %v2837_v46  ;;  %v1577_v44 = vld [vmem:[#allocation8 + $0x108] sm:$0xff] }
 0x21a   :  { %v1156_v16 = vmul.f32 %v1134_v40, %v2846_v56  ;;  %3948 = vst [vmem:[#allocation56_spill] sm:$0xff] %v3137_v35  ;;  %v1588_v1 = vmul.f32 %v1577_v44, %v2819_v25 }
 0x21b   :  { %2202 = vmatmul.mubr.msk.f32.vlgmr.msra.gmra.mrb[6].mxu0 %vm416_vm1, %v2851_v5  ;;  %v3126_v11 = vmul.f32 %v1135_v3, %v2853_v6 }
 0x21c   :  { %2223 = vmatprep.mubr.msk.f32.mxu0 %vm2736_vm0, %v3935_v0  ;;  %v1167_v43 = vmul.f32 %v1156_v16, %v1156_v16  ;;  %v3142_v49 = vadd.f32 %v1588_v1, %v2821_v29  ;;  %v1610_v16 = vmul.f32 %v1588_v1, %v2827_v34 }
 0x21d   :  { %3945 = vst [vmem:[#allocation53_spill] sm:$0xff] %v3126_v11  ;;  %v1589_v11 = vmul.f32 %v1578_v8, %v2823_v30 }
 0x21e   :  { %v3134_v27 = vadd.f32 %v3041_v12, %v1167_v43  ;;  %v1621_v43 = vmul.f32 %v1610_v16, %v1610_v16 }
 0x21f   :  { %v3145_v62 = vadd.f32 %v1589_v11, %v2825_v33  ;;  %v1611_v12 = vmul.f32 %v1589_v11, %v2830_v39 }
 0x220   :  { %3947 = vst [vmem:[#allocation55_spill] sm:$0xff] %v3134_v27  ;;  %v1655_v27 = vmul.f32 %v3142_v49, %v3142_v49 }
 0x221   :  { %v1656_v35 = vmul.f32 %v3145_v62, %v3145_v62  ;;  %v1622_v25 = vmul.f32 %v1611_v12, %v1611_v12 }
 0x222   :  { %v1666_v44 = vmul.f32 -7.5, %v1655_v27  ;;  %v1743_v21 = vmul.f32 0.5, %v1655_v27 }
 0x223   :  { %v1667_v30 = vmul.f32 -7.5, %v1656_v35  ;;  %v3153_v8 = vadd.f32 %v1622_v25, %v1621_v43  ;;  %v1744_v7 = vmul.f32 0.5, %v1656_v35 }
 0x224   :  { %v1677_v29 = vmul.f32 1.442695, %v1666_v44 }
 0x225   :  { %v1679_v26 = vmul.f32 1.442695, %v1667_v30  ;;  %v3951_v30 = vlaneseq }
 0x226   :  { %2432 = vpow2.f32 %v1677_v29 }
 0x227   :  { %2434 = vpow2.f32 %v1679_v26  ;;  %v3158_v26 = vsub.s32 2, %v2958_v18  ;;  %v3161_v29 = vand.u32 127, %v3951_v30  ;;  %v953_v18 = vrot.slane %v3055_v42, %v3046_v13 }
 0x228   :  { %v3194_v30 = vadd.f32 %v1137_v31, %v2874_v20  ;;  %v2301_v31 = vpack.c.bf16 %v3145_v62, %v3142_v49 }
 0x229   :  { %3950 = vst [vmem:[#allocation58_spill] sm:$0xff] %v3158_v26  ;;  %3952 = vst [vmem:[#allocation59_spill] sm:$0xff] %v3161_v29  ;;  %vm649_vm3 = vcmp.lt.s32.totalorder %v3161_v29, 8 }
 0x230   :  { %v2433_v33 = vpop.eup %2432 }
 0x231   :  { %v2435_v34 = vpop.eup %2434  ;;  %v1699_v1 = vmul.f32 0.8, %v2433_v33  ;;  %v573_v33 = vrot.slane %v2964_v32, %v3158_v26 }
 0x232   :  { %v1700_v39 = vmul.f32 0.8, %v2435_v34  ;;  %v1131_v34 = vld [vmem:[#allocation8 + $0x100] sm:$0xff] }
 0x233   :  { %v1710_v11 = vadd.f32 0.2, %v1699_v1  ;;  %v3184_v1 = vadd.f32 %v1135_v3, %v2843_v51 }
 0x234   :  { %v1711_v16 = vadd.f32 0.2, %v1700_v39 }
 0x235   :  { %2436 = vlog2.f32 %v1710_v11 }
 0x236   :  { %2438 = vlog2.f32 %v1711_v16 }
 0x23f   :  { %v2437_v36 = vpop.eup %2436 }
 0x240   :  { %v2439_v12 = vpop.eup %2438  ;;  %v1722_v52 = vmul.f32 0.6931472, %v2437_v36 }
 0x241   :  { %v1724_v2 = vmul.f32 0.6931472, %v2439_v12 }
 0x242   :  { %v1754_v43 = vsub.f32 %v1722_v52, %v1743_v21  ;;  %v3167_v52 = vmul.f32 %v1131_v34, %v2952_v9  ;;  %v3181_v21 = vadd.f32 %v1134_v40, %v2841_v50 }
 0x243   :  { %v1755_v25 = vsub.f32 %v1724_v2, %v1744_v7 }
 0x244   :  { %3953 = vst [vmem:[#allocation60_spill] sm:$0xff] %v3167_v52  ;;  %v3178_v7 = vadd.f32 %v3167_v52, %v2960_v22 }
 0x245   :  { %v3155_v44 = vadd.f32 %v1755_v25, %v1754_v43  ;;  %v2289_v43 = vpack.c.bf16 %v3184_v1, %v3181_v21  ;;  %v3191_v25 = vadd.f32 %v1136_v57, %v2872_v19 }
 0x246   :  { %v1334_v12 = vrot.slane %v3178_v7, %v2967_v37 }
 0x247   :  { %3949 = vst [vmem:[#allocation57_spill] sm:$0xff] %v3155_v44 }
 0x2e2   :  { %v643_v27 = vpop.f32.mrb[2].mxu0 }
 0x2e3   :  { %v644_v35 = vadd.f32 %v643_v27, %v573_v33  ;;  %v2167_v36 = vpop.f32.mrb[3].mxu0  ;;  %v2292_v27 = vpack.c.bf16 %v3194_v30, %v3191_v25 }
 0x2e4   :  { %v1128_v36 = vld [vmem:[#allocation8 + $0xe8] sm:$0xff] }
 0x2e5   :  { %v3171_v2 = vsel %vm649_vm3, %v644_v35, -1e+30  ;;  %v1127_v35 = vld [vmem:[#allocation8 + $0xe0] sm:$0xff]  ;;  %v3217_v62 = vmul.f32 %v1128_v36, %v2926_v60 }
 0x2e6   :  { %3954 = vst [vmem:[#allocation61_spill] sm:$0xff] %v3171_v2  ;;  %651 = vmax.xlane.f32.xlu0 %v3171_v2  ;;  %v3214_v49 = vmul.f32 %v1127_v35, %v2922_v53 }
 0x2e7   :  { %3956 = vst [vmem:[#allocation63_spill] sm:$0xff] %v3217_v62 }
 0x2e8   :  { %3955 = vst [vmem:[#allocation62_spill] sm:$0xff] %v3214_v49 }
 0x2ea   :  { %v1023_v39 = vpop.f32.mrb[4].mxu0 }
 0x2eb   :  { %v1024_v11 = vadd.f32 %v1023_v39, %v953_v18  ;;  %v2185_v16 = vpop.f32.mrb[5].mxu0  ;;  %v3221_v18 = vadd.f32 %v3214_v49, %v2924_v58  ;;  %v3225_v39 = vadd.f32 %v3217_v62, %v2928_v61  ;;  %v2602_v49 = vld [vmem:[#allocation6 + $0x58] sm:$0xff] }
 0x2ed   :  { %v1027_v40 = vmax.f32 %v1024_v11, 0.0  ;;  %v1130_v11 = vld [vmem:[#allocation8 + $0xf8] sm:$0xff]  ;;  %v2295_v16 = vpack.c.bf16 %v3225_v39, %v3221_v18 }
 0x2ee   :  { %v1401_v33 = vpop.f32.mrb[6].mxu0 }
 0x2ef   :  { %2195 = vmatmul.mubr.msk.f32.vlgmr.msra.gmra.mrb[4].mxu1 %vm495_vm2, %v1027_v40  ;;  %v1402_v3 = vadd.f32 %v1401_v33, %v1334_v12  ;;  %v2203_v34 = vpop.f32.mrb[7].mxu0  ;;  %2296 = vmatpush3.bf16.msra.mxu0 %v2295_v16  ;;  %v1579_v33 = vld [vmem:[#allocation8 + $0x118] sm:$0xff] }
 0x2f0   :  { %2290 = vmatpush3.bf16.msra.mxu1 %v2289_v43  ;;  %2212 = vmatprep.mubr.msk.f32.mxu1 %vm2736_vm0, %v3935_v0  ;;  %v3233_v43 = vmul.f32 %v1130_v11, %v2995_v38  ;;  %v1590_v34 = vmul.f32 %v1579_v33, %v2833_v41 }
 0x2f1   :  { %2291 = vmatprep.subr.bf16.mxu1 %v3936_v17  ;;  %v1405_v57 = vmax.f32 %v1402_v3, 0.0  ;;  %2297 = vmatprep.subr.bf16.mxu0 %v3936_v17  ;;  %v1580_v3 = vld [vmem:[#allocation8 + $0x120] sm:$0xff] }
 0x2f2   :  { %3958 = vst [vmem:[#allocation65_spill] sm:$0xff] %v3233_v43  ;;  %v3242_v61 = vadd.f32 %v3233_v43, %v3002_v47  ;;  %v1612_v35 = vmul.f32 %v1590_v34, %v2846_v56  ;;  %v3269_v56 = vmul.f32 %v2878_v23, %v2878_v23 }
 0x2f4   :  { %2293 = vmatpush3.bf16.msra.mxu1 %v2292_v27  ;;  %v1591_v27 = vmul.f32 %v1580_v3, %v2837_v46  ;;  %v1623_v11 = vmul.f32 %v1612_v35, %v1612_v35  ;;  %v3292_v3 = vmul.f32 %v3184_v1, %v3184_v1 }
 0x2f5   :  { %2300 = vmatprep.subr.bf16.mxu1 %v3936_v17 }
 0x2f6   :  { %v3251_v36 = vmul.f32 %v1591_v27, %v2853_v6  ;;  %v3261_v41 = vadd.f32 %v3153_v8, %v1623_v11  ;;  %v3273_v6 = vmul.f32 %v2881_v24, %v2881_v24  ;;  %v3279_v8 = vmul.f32 %v3058_v54, %v3058_v54 }
 0x2f7   :  { %2213 = vmatmul.mubr.msk.f32.vlgmr.msra.gmra.mrb[6].mxu1 %vm495_vm2, %v1405_v57  ;;  %v1581_v57 = vld [vmem:[#allocation8 + $0x128] sm:$0xff]  ;;  %v3288_v24 = vmul.f32 %v3181_v21, %v3181_v21  ;;  %v3320_v43 = vadd.f32 %v1591_v27, %v2843_v51 }
 0x2f8   :  { %2302 = vmatpush3.bf16.msra.mxu1 %v2301_v31  ;;  %2230 = vmatprep.mubr.msk.f32.mxu1 %vm2736_vm0, %v3935_v0  ;;  %v1582_v31 = vld [vmem:[#allocation8 + $0x130] sm:$0xff]  ;;  %3959 = vst [vmem:[#allocation66_spill] sm:$0xff] %v3251_v36  ;;  %3961 = vst [vmem:[#allocation68_spill] sm:$0xff] %v3261_v41  ;;  %v756_v23 = vmul.f32 -7.5, %v3279_v8 }
 0x2f9   :  { %2309 = vmatprep.subr.bf16.mxu1 %v3936_v17  ;;  %v3255_v16 = vmul.f32 %v1582_v31, %v2869_v15  ;;  %v296_v15 = vmul.f32 -7.5, %v3273_v6  ;;  %v1212_v31 = vmul.f32 -7.5, %v3288_v24 }
 0x2fb   :  { %2231 = vmatmul.mubr.msk.f32.vlgmr.msra.gmra.mrb[8].mxu1 %vm416_vm1, %v2851_v5  ;;  %v1129_v5 = vld [vmem:[#allocation8 + $0xf0] sm:$0xff]  ;;  %v3265_v46 = vmul.f32 %v3255_v16, %v2907_v59  ;;  %v312_v33 = vmul.f32 1.442695, %v296_v15  ;;  %v3283_v59 = vmul.f32 %v3061_v48, %v3061_v48  ;;  %v1213_v48 = vmul.f32 -7.5, %v3292_v3 }
 0x2fc   :  { %2252 = vmatprep.mubr.msk.f32.mxu1 %vm2736_vm0, %v3935_v0  ;;  %v3230_v12 = vmul.f32 %v1129_v5, %v2993_v28  ;;  %v1592_v5 = vmul.f32 %v1581_v57, %v2867_v14  ;;  %v295_v14 = vmul.f32 -7.5, %v3269_v56  ;;  %v769_v57 = vmul.f32 1.442695, %v756_v23 }
 0x2fd   :  { %3962 = vst [vmem:[#allocation69_spill] sm:$0xff] %v3265_v46  ;;  %v757_v54 = vmul.f32 -7.5, %v3283_v59  ;;  %v1225_v11 = vmul.f32 1.442695, %v1212_v31  ;;  %v3303_v23 = vmul.f32 %v3071_v55, %v3071_v55 }
 0x2fe   :  { %3957 = vst [vmem:[#allocation64_spill] sm:$0xff] %v3230_v12  ;;  %v3237_v58 = vadd.f32 %v3230_v12, %v3000_v45 }
 0x2ff   :  { %v771_v35 = vmul.f32 1.442695, %v757_v54 }
 0x300   :  { %v2298_v40 = vpack.c.bf16 %v3242_v61, %v3237_v58 }
 0x302   :  { %2299 = vmatpush3.bf16.msra.mxu0 %v2298_v40  ;;  %v3258_v40 = vmul.f32 %v1592_v5, %v2905_v4  ;;  %v310_v4 = vmul.f32 1.442695, %v295_v14  ;;  %v1227_v14 = vmul.f32 1.442695, %v1213_v48 }
 0x303   :  { %2303 = vmatprep.subr.bf16.mxu0 %v3936_v17 }
 0x304   :  { %3960 = vst [vmem:[#allocation67_spill] sm:$0xff] %v3258_v40  ;;  %2440 = vpow2.f32 %v310_v4  ;;  %v3299_v4 = vmul.f32 %v3068_v10, %v3068_v10  ;;  %v759_v10 = vmul.f32 -7.5, %v3303_v23 }
 0x305   :  { %2442 = vpow2.f32 %v312_v33 }
 0x306   :  { %2444 = vpow2.f32 %v769_v57  ;;  %v758_v54 = vmul.f32 -7.5, %v3299_v4  ;;  %v775_v52 = vmul.f32 1.442695, %v759_v10  ;;  %v3400_v36 = vmul.f32 0.5, %v3299_v4 }
 0x307   :  { %2446 = vpow2.f32 %v771_v35  ;;  %v3308_v35 = vmul.f32 %v3191_v25, %v3191_v25  ;;  %v3412_v4 = vmul.f32 0.5, %v3288_v24 }
 0x308   :  { %2448 = vpow2.f32 %v1225_v11  ;;  %v773_v11 = vmul.f32 1.442695, %v758_v54 }
 0x309   :  { %2450 = vpow2.f32 %v1227_v14  ;;  %v3313_v14 = vmul.f32 %v3194_v30, %v3194_v30  ;;  %3973 = vst [vmem:[#allocation74_spill] sm:$0xff] %v3412_v4 }
 0x30b   :  { %3963 = vst [vmem:[#allocation70_spill] sm:$0xff] %v3313_v14  ;;  %v1215_v30 = vmul.f32 -7.5, %v3313_v14 }
 0x30e   :  { %v2441_v15 = vpop.eup %2440 }
 0x30f   :  { %v2443_v21 = vpop.eup %2442  ;;  %v328_v1 = vmul.f32 0.8, %v2441_v15  ;;  %v3316_v15 = vadd.f32 %v1590_v34, %v2841_v50  ;;  %v3329_v34 = vmul.f32 %v3320_v43, %v3320_v43 }
 0x310   :  { %v329_v33 = vmul.f32 0.8, %v2443_v21  ;;  %v2445_v31 = vpop.eup %2444 }
 0x311   :  { %v339_v57 = vadd.f32 0.2, %v328_v1  ;;  %v2447_v2 = vpop.eup %2446  ;;  %v789_v55 = vmul.f32 0.8, %v2445_v31  ;;  %v1214_v1 = vmul.f32 -7.5, %v3308_v35  ;;  %v3324_v54 = vmul.f32 %v3316_v15, %v3316_v15  ;;  %3965 = vst [vmem:[#allocation72_spill] sm:$0xff] %v3329_v34 }
 0x312   :  { %v340_v48 = vadd.f32 0.2, %v329_v33  ;;  %v2449_v21 = vpop.eup %2448  ;;  %v790_v25 = vmul.f32 0.8, %v2447_v2  ;;  %v3332_v31 = vadd.f32 %v1592_v5, %v2872_v19  ;;  %v1669_v19 = vmul.f32 -7.5, %v3329_v34  ;;  %v3967_v5 = vld [vmem:[#allocation27_spill] sm:$0xff] }
 0x313   :  { %2452 = vlog2.f32 %v339_v57  ;;  %v2451_v33 = vpop.eup %2450  ;;  %3964 = vst [vmem:[#allocation71_spill] sm:$0xff] %v3324_v54  ;;  %v800_v57 = vadd.f32 0.2, %v789_v55  ;;  %v1245_v50 = vmul.f32 0.8, %v2449_v21  ;;  %v1668_v27 = vmul.f32 -7.5, %v3324_v54 }
 0x314   :  { %2454 = vlog2.f32 %v340_v48  ;;  %v1246_v2 = vmul.f32 0.8, %v2451_v33  ;;  %v1229_v48 = vmul.f32 1.442695, %v1214_v1  ;;  %v801_v51 = vadd.f32 0.2, %v790_v25 }
 0x315   :  { %2456 = vpow2.f32 %v773_v11  ;;  %v3337_v10 = vmul.f32 %v3332_v31, %v3332_v31  ;;  %v1231_v11 = vmul.f32 1.442695, %v1215_v30  ;;  %v3341_v55 = vmul.f32 %v2940_v63, %v2940_v63  ;;  %v2606_v54 = vld [vmem:[#allocation6 + $0x78] sm:$0xff] }
 0x316   :  { %2458 = vpow2.f32 %v775_v52  ;;  %v1256_v21 = vadd.f32 0.2, %v1245_v50  ;;  %v3346_v1 = vmul.f32 %v3967_v5, %v3967_v5  ;;  %v1257_v52 = vadd.f32 0.2, %v1246_v2  ;;  %v2603_v5 = vld [vmem:[#allocation6 + $0x60] sm:$0xff] }
 0x317   :  { %3966 = vst [vmem:[#allocation73_spill] sm:$0xff] %v3337_v10  ;;  %2460 = vlog2.f32 %v800_v57  ;;  %v1681_v25 = vmul.f32 1.442695, %v1668_v27  ;;  %v1670_v12 = vmul.f32 -7.5, %v3337_v10  ;;  %v297_v63 = vmul.f32 -7.5, %v3341_v55 }
 0x318   :  { %2462 = vpow2.f32 %v1229_v48  ;;  %v1683_v57 = vmul.f32 1.442695, %v1669_v19  ;;  %v298_v62 = vmul.f32 -7.5, %v3346_v1  ;;  %v181_v41 = vadd.f32 %v2603_v5, %v2602_v49  ;;  %v3969_v49 = vld [vmem:[#allocation48_spill] sm:$0xff] }
 0x319   :  { %2464 = vlog2.f32 %v801_v51  ;;  %v3354_v48 = vmul.f32 0.5, %v3269_v56  ;;  %v1685_v51 = vmul.f32 1.442695, %v1670_v12  ;;  %v314_v46 = vmul.f32 1.442695, %v297_v63 }
 0x31a   :  { %2466 = vpow2.f32 %v1231_v11  ;;  %v3359_v11 = vmul.f32 0.5, %v3273_v6  ;;  %v316_v56 = vmul.f32 1.442695, %v298_v62  ;;  %v3373_v5 = vadd.f32 %v3255_v16, %v2874_v20 }
 0x31b   :  { %2468 = vlog2.f32 %v1256_v21  ;;  %v3968_v21 = vld [vmem:[#allocation47_spill] sm:$0xff]  ;;  %v3380_v62 = vmul.f32 %v3221_v18, %v3221_v18  ;;  %v2605_v18 = vld [vmem:[#allocation6 + $0x70] sm:$0xff] }
 0x31c   :  { %2470 = vlog2.f32 %v1257_v52  ;;  %v3363_v19 = vmul.f32 %v3968_v21, %v3968_v21  ;;  %v3385_v20 = vmul.f32 %v3373_v5, %v3373_v5 }
 0x31d   :  { %v2453_v33 = vpop.eup %2452  ;;  %2472 = vpow2.f32 %v1681_v25  ;;  %v2604_v25 = vld [vmem:[#allocation6 + $0x68] sm:$0xff]  ;;  %3970 = vst [vmem:[#allocation27_spill] sm:$0xff] %v3380_v62  ;;  %v1216_v34 = vmul.f32 -7.5, %v3380_v62 }
 0x31e   :  { %v2455_v30 = vpop.eup %2454  ;;  %v3351_v2 = vmul.f32 0.6931472, %v2453_v33  ;;  %v3367_v33 = vmul.f32 %v3969_v49, %v3969_v49  ;;  %2474 = vpow2.f32 %v1683_v57  ;;  %v182_v12 = vadd.f32 %v2604_v25, %v181_v41  ;;  %3971 = vst [vmem:[#allocation47_spill] sm:$0xff] %v3385_v20 }
 0x31f   :  { %v2457_v50 = vpop.eup %2456  ;;  %v3356_v27 = vmul.f32 0.6931472, %v2455_v30  ;;  %2476 = vpow2.f32 %v1685_v51  ;;  %v760_v49 = vmul.f32 -7.5, %v3363_v19  ;;  %v3388_v51 = vmul.f32 0.5, %v3279_v8 }
 0x320   :  { %v2459_v52 = vpop.eup %2458  ;;  %v791_v40 = vmul.f32 0.8, %v2457_v50  ;;  %2478 = vpow2.f32 %v314_v46  ;;  %v761_v25 = vmul.f32 -7.5, %v3367_v33  ;;  %v183_v63 = vadd.f32 %v2605_v18, %v182_v12 }
 0x321   :  { %v2461_v30 = vpop.eup %2460  ;;  %v792_v50 = vmul.f32 0.8, %v2459_v52  ;;  %2480 = vpow2.f32 %v316_v56  ;;  %v3392_v52 = vmul.f32 %v3225_v39, %v3225_v39  ;;  %v3405_v8 = vmul.f32 0.5, %v3303_v23 }
 0x322   :  { %v2463_v21 = vpop.eup %2462  ;;  %v802_v57 = vadd.f32 0.2, %v791_v40  ;;  %v3394_v46 = vmul.f32 0.6931472, %v2461_v30  ;;  %v3397_v40 = vmul.f32 0.5, %v3283_v59  ;;  %v1671_v59 = vmul.f32 -7.5, %v3385_v20 }
 0x323   :  { %v2465_v41 = vpop.eup %2464  ;;  %3972 = vst [vmem:[#allocation48_spill] sm:$0xff] %v3392_v52  ;;  %v1247_v44 = vmul.f32 0.8, %v2463_v21  ;;  %v3402_v10 = vadd.f32 0.2, %v792_v50  ;;  %v1217_v50 = vmul.f32 -7.5, %v3392_v52  ;;  %v184_v14 = vadd.f32 %v2606_v54, %v183_v63 }
 0x324   :  { %v2467_v16 = vpop.eup %2466  ;;  %v777_v39 = vmul.f32 1.442695, %v760_v49  ;;  %v3408_v18 = vmul.f32 0.6931472, %v2465_v41  ;;  %2482 = vlog2.f32 %v802_v57  ;;  %v779_v30 = vmul.f32 1.442695, %v761_v25 }
 0x325   :  { %v2469_v6 = vpop.eup %2468  ;;  %v1248_v21 = vmul.f32 0.8, %v2467_v16  ;;  %v3420_v41 = vmul.f32 0.5, %v3292_v3  ;;  %v1258_v57 = vadd.f32 0.2, %v1247_v44  ;;  %v1587_v25 = vld [vmem:[#allocation8 + $0x158] sm:$0xff] }
 0x326   :  { %v2471_v56 = vpop.eup %2470  ;;  %v3417_v62 = vmul.f32 0.6931472, %v2469_v6  ;;  %2484 = vpow2.f32 %v777_v39  ;;  %v1233_v24 = vmul.f32 1.442695, %v1216_v34  ;;  %v3427_v63 = vmul.f32 0.5, %v3308_v35  ;;  %v2607_v44 = vld [vmem:[#allocation6 + $0x80] sm:$0xff] }
 0x327   :  { %v2473_v12 = vpop.eup %2472  ;;  %3975 = vst [vmem:[#allocation76_spill] sm:$0xff] %v3420_v41  ;;  %v3422_v20 = vmul.f32 0.6931472, %v2471_v56  ;;  %2486 = vpow2.f32 %v779_v30  ;;  %v1687_v6 = vmul.f32 1.442695, %v1671_v59  ;;  %v3430_v3 = vmul.f32 %v1587_v25, %v2952_v9  ;;  %v3980_v30 = vld [vmem:[#allocation36_spill] sm:$0xff] }
 0x328   :  { %v2475_v23 = vpop.eup %2474  ;;  %3974 = vst [vmem:[#allocation75_spill] sm:$0xff] %v3417_v62  ;;  %v1701_v16 = vmul.f32 0.8, %v2473_v12  ;;  %3977 = vst [vmem:[#allocation78_spill] sm:$0xff] %v3427_v63  ;;  %v1235_v49 = vmul.f32 1.442695, %v1217_v50  ;;  %v185_v39 = vadd.f32 %v2607_v44, %v184_v14  ;;  %2488 = vlog2.f32 %v1258_v57 }
 0x329   :  { %3976 = vst [vmem:[#allocation77_spill] sm:$0xff] %v3422_v20  ;;  %v2477_v17 = vpop.eup %2476  ;;  %v1702_v52 = vmul.f32 0.8, %v2475_v23  ;;  %3978 = vst [vmem:[#allocation79_spill] sm:$0xff] %v3430_v3  ;;  %v3436_v12 = vadd.f32 0.2, %v1248_v21  ;;  %v3440_v35 = vmul.f32 %v3980_v30, %v3980_v30  ;;  %2490 = vpow2.f32 %v1233_v24 }
 0x32a   :  { %v3432_v56 = vpop.eup %2478  ;;  %v1712_v50 = vadd.f32 0.2, %v1701_v16  ;;  %v1703_v14 = vmul.f32 0.8, %v2477_v17  ;;  %2492 = vpow2.f32 %v1687_v6  ;;  %v3981_v25 = vld [vmem:[#allocation37_spill] sm:$0xff]  ;;  %v3455_v30 = vadd.f32 %v3430_v3, %v2960_v22  ;;  %v3982_v9 = vld [vmem:[#allocation19_spill] sm:$0xff] }
 0x32b   :  { %3979 = vst [vmem:[#allocation80_spill] sm:$0xff] %v3436_v12  ;;  %v3442_v59 = vpop.eup %2480  ;;  %v3450_v21 = vmul.f32 %v3981_v25, %v3981_v25  ;;  %v299_v57 = vmul.f32 -7.5, %v3440_v35  ;;  %2494 = vpow2.f32 %v1235_v49  ;;  %v1713_v44 = vadd.f32 0.2, %v1702_v52  ;;  %v3983_v34 = vld [vmem:[#allocation51_spill] sm:$0xff]  ;;  %v2608_v3 = vld [vmem:[#allocation6 + $0x90] sm:$0xff] }
 0x32c   :  { %v186_v24 = vadd.f32 %v185_v39, %v3982_v9  ;;  %v3462_v17 = vmul.f32 %v2964_v32, %v2964_v32  ;;  %v3467_v54 = vmul.f32 %v3983_v34, %v3983_v34  ;;  %2496 = vlog2.f32 %v1712_v50  ;;  %v3984_v9 = vld [vmem:[#allocation52_spill] sm:$0xff]  ;;  %v1584_v20 = vld [vmem:[#allocation8 + $0x140] sm:$0xff] }
 0x32d   :  { %v300_v6 = vmul.f32 -7.5, %v3450_v21  ;;  %v318_v25 = vmul.f32 1.442695, %v299_v57  ;;  %v1714_v49 = vadd.f32 0.2, %v1703_v14  ;;  %v3476_v23 = vmul.f32 %v3984_v9, %v3984_v9  ;;  %v1583_v9 = vld [vmem:[#allocation8 + $0x138] sm:$0xff] }
 0x32e   :  { %v3458_v16 = vpop.eup %2482  ;;  %v301_v39 = vmul.f32 -7.5, %v3462_v17  ;;  %v187_v52 = vadd.f32 %v2608_v3, %v186_v24  ;;  %v762_v50 = vmul.f32 -7.5, %v3467_v54  ;;  %v3490_v3 = vmul.f32 %v3237_v58, %v3237_v58  ;;  %v1586_v62 = vld [vmem:[#allocation8 + $0x150] sm:$0xff] }
 0x32f   :  { %2498 = vpow2.f32 %v318_v25  ;;  %v320_v32 = vmul.f32 1.442695, %v300_v6  ;;  %3985 = vst [vmem:[#allocation36_spill] sm:$0xff] %v3476_v23  ;;  %v3483_v25 = vmul.f32 %v3055_v42, %v3055_v42  ;;  %v763_v6 = vmul.f32 -7.5, %v3476_v23 }
 0x330   :  { %v2485_v57 = vpop.eup %2484  ;;  %2500 = vlog2.f32 %v1713_v44  ;;  %v322_v14 = vmul.f32 1.442695, %v301_v39  ;;  %v781_v22 = vmul.f32 1.442695, %v762_v50  ;;  %3987 = vst [vmem:[#allocation19_spill] sm:$0xff] %v3490_v3  ;;  %v3497_v34 = vmul.f32 %v3242_v61, %v3242_v61  ;;  %v3989_v44 = vld [vmem:[#allocation30_spill] sm:$0xff] }
 0x331   :  { %v2487_v41 = vpop.eup %2486  ;;  %2502 = vpow2.f32 %v320_v32  ;;  %3986 = vst [vmem:[#allocation37_spill] sm:$0xff] %v3483_v25  ;;  %v764_v39 = vmul.f32 -7.5, %v3483_v25  ;;  %v783_v32 = vmul.f32 1.442695, %v763_v6  ;;  %v188_v50 = vadd.f32 %v187_v52, %v3989_v44 }
 0x332   :  { %2504 = vlog2.f32 %v1714_v49  ;;  %v3492_v24 = vpop.eup %2488  ;;  %3988 = vst [vmem:[#allocation51_spill] sm:$0xff] %v3497_v34  ;;  %v1585_v49 = vld [vmem:[#allocation8 + $0x148] sm:$0xff]  ;;  %v1218_v58 = vmul.f32 -7.5, %v3490_v3  ;;  %v3504_v63 = vmul.f32 %v1583_v9, %v2922_v53  ;;  %v3508_v61 = vmul.f32 %v3178_v7, %v3178_v7 }
 0x333   :  { %2506 = vpow2.f32 %v322_v14  ;;  %v3499_v4 = vpop.eup %2490  ;;  %v785_v6 = vmul.f32 1.442695, %v764_v39  ;;  %v1219_v25 = vmul.f32 -7.5, %v3497_v34  ;;  %v330_v52 = vmul.f32 0.8, %v3432_v56 }
 0x334   :  { %2508 = vpow2.f32 %v781_v22  ;;  %3990 = vst [vmem:[#allocation52_spill] sm:$0xff] %v3504_v63  ;;  %v2493_v14 = vpop.eup %2492  ;;  %3991 = vst [vmem:[#allocation30_spill] sm:$0xff] %v3508_v61  ;;  %v1237_v22 = vmul.f32 1.442695, %v1218_v58  ;;  %v3515_v44 = vmul.f32 %v1584_v20, %v2926_v60  ;;  %v3518_v53 = vmul.f32 %v1585_v49, %v2993_v28  ;;  %v3995_v20 = vld [vmem:[#allocation31_spill] sm:$0xff]  ;;  %v2609_v49 = vld [vmem:[#allocation6 + $0x30] sm:$0xff] }
 0x335   :  { %2510 = vpow2.f32 %v783_v32  ;;  %v3511_v12 = vpop.eup %2494  ;;  %v1220_v9 = vmul.f32 -7.5, %v3508_v61  ;;  %v1239_v39 = vmul.f32 1.442695, %v1219_v25  ;;  %v3522_v32 = vmul.f32 %v1586_v62, %v2995_v38 }
 0x336   :  { %3992 = vst [vmem:[#allocation81_spill] sm:$0xff] %v3515_v44  ;;  %3993 = vst [vmem:[#allocation82_spill] sm:$0xff] %v3518_v53  ;;  %2512 = vpow2.f32 %v785_v6  ;;  %v3524_v3 = vpop.eup %2496  ;;  %v3526_v34 = vmul.f32 0.8, %v2493_v14  ;;  %v331_v56 = vmul.f32 0.8, %v3442_v59  ;;  %v189_v23 = vadd.f32 %v188_v50, %v3995_v20 }
 0x337   :  { %3994 = vst [vmem:[#allocation83_spill] sm:$0xff] %v3522_v32  ;;  %v341_v58 = vadd.f32 0.2, %v330_v52  ;;  %2514 = vpow2.f32 %v1237_v22  ;;  %v1241_v28 = vmul.f32 1.442695, %v1220_v9  ;;  %v3531_v6 = vadd.f32 %v2609_v49, %v3504_v63  ;;  %v2610_v59 = vld [vmem:[#allocation6 + $0x38] sm:$0xff] }
 0x338   :  { %2516 = vpow2.f32 %v1239_v39  ;;  %v342_v62 = vadd.f32 0.2, %v331_v56  ;;  %v793_v14 = vmul.f32 0.8, %v2485_v57  ;;  %v3536_v52 = vadd.f32 %v2610_v59, %v3515_v44 }
 0x339   :  { %v2499_v60 = vpop.eup %2498  ;;  %3996 = vst [vmem:[#allocation31_spill] sm:$0xff] %v3531_v6  ;;  %2518 = vlog2.f32 %v341_v58  ;;  %v3540_v50 = vadd.f32 %v3518_v53, %v3000_v45  ;;  %v3544_v22 = vadd.f32 %v3522_v32, %v3002_v47  ;;  %v794_v57 = vmul.f32 0.8, %v2487_v41 }
 0x33a   :  { %v3533_v25 = vpop.eup %2500  ;;  %v332_v38 = vmul.f32 0.8, %v2499_v60  ;;  %2520 = vpow2.f32 %v1241_v28  ;;  %3997 = vst [vmem:[#allocation84_spill] sm:$0xff] %v3536_v52  ;;  %v2611_v60 = vld [vmem:[#allocation6 + $0xa8] sm:$0xff]  ;;  %v804_v28 = vadd.f32 0.2, %v793_v14  ;;  %v3551_v45 = vmul.f32 %v3531_v6, %v3531_v6 }
 0x33b   :  { %v2503_v61 = vpop.eup %2502  ;;  %3998 = vst [vmem:[#allocation85_spill] sm:$0xff] %v3540_v50  ;;  %3999 = vst [vmem:[#allocation86_spill] sm:$0xff] %v3544_v22  ;;  %2522 = vlog2.f32 %v342_v62  ;;  %v190_v20 = vadd.f32 %v2611_v60, %v189_v23  ;;  %v805_v32 = vadd.f32 0.2, %v794_v57  ;;  %v3555_v41 = vmul.f32 %v3536_v52, %v3536_v52 }
 0x33c   :  { %v3546_v9 = vpop.eup %2504  ;;  %v333_v39 = vmul.f32 0.8, %v2503_v61  ;;  %v343_v56 = vadd.f32 0.2, %v332_v38  ;;  %2524 = vlog2.f32 %v3402_v10  ;;  %v3559_v23 = vmul.f32 %v3540_v50, %v3540_v50 }
 0x33d   :  { %v2507_v58 = vpop.eup %2506  ;;  %v3563_v14 = vmul.f32 %v3544_v22, %v3544_v22  ;;  %v1250_v29 = vmul.f32 0.8, %v3511_v12  ;;  %v375_v52 = vmul.f32 0.5, %v3346_v1  ;;  %v4008_v1 = vrot.slane %v3178_v7, %v3046_v13 }
 0x33e   :  { %v2509_v49 = vpop.eup %2508  ;;  %v334_v59 = vmul.f32 0.8, %v2507_v58  ;;  %v344_v47 = vadd.f32 0.2, %v333_v39  ;;  %2526 = vlog2.f32 %v343_v56  ;;  %v4000_v56 = vrot.slane %v3055_v42, %v3158_v26 }
 0x33f   :  { %v2511_v53 = vpop.eup %2510  ;;  %v795_v61 = vmul.f32 0.8, %v2509_v49  ;;  %2528 = vlog2.f32 %v804_v28  ;;  %v3570_v28 = vmul.f32 %v3455_v30, %v3455_v30  ;;  %v3578_v42 = vmul.f32 -7.5, %v3551_v45 }
 0x340   :  { %v345_v38 = vadd.f32 0.2, %v334_v59  ;;  %2530 = vlog2.f32 %v344_v47  ;;  %v796_v62 = vmul.f32 0.8, %v2511_v53  ;;  %v2513_v39 = vpop.eup %2512  ;;  %v1249_v47 = vmul.f32 0.8, %v3499_v4 }
 0x341   :  { %v806_v60 = vadd.f32 0.2, %v795_v61  ;;  %2532 = vlog2.f32 %v805_v32  ;;  %v2515_v49 = vpop.eup %2514  ;;  %v797_v59 = vmul.f32 0.8, %v2513_v39  ;;  %v3581_v32 = vmul.f32 -7.5, %v3555_v41 }
 0x342   :  { %2534 = vlog2.f32 %v345_v38  ;;  %v807_v53 = vadd.f32 0.2, %v796_v62  ;;  %v2517_v44 = vpop.eup %2516  ;;  %v3585_v38 = vmul.f32 -7.5, %v3559_v23  ;;  %v3588_v4 = vmul.f32 -7.5, %v3563_v14 }
 0x343   :  { %2536 = vlog2.f32 %v806_v60  ;;  %v2519_v61 = vpop.eup %2518  ;;  %v3601_v50 = vadd.f32 0.2, %v1249_v47  ;;  %v3611_v47 = vmul.f32 -7.5, %v3570_v28 }
 0x344   :  { %2538 = vlog2.f32 %v807_v53  ;;  %v2521_v62 = vpop.eup %2520  ;;  %v359_v39 = vmul.f32 0.6931472, %v2519_v61  ;;  %v4004_v53 = vsub.f32 %v3394_v46, %v3388_v51  ;;  %v1251_v46 = vmul.f32 0.8, %v2515_v49 }
 0x345   :  { %v2523_v26 = vpop.eup %2522 }
 0x346   :  { %v2525_v61 = vpop.eup %2524 }
 0x3c2   :  { %v1101_v10 = vpop.f32.mrb[4].mxu1 }
 0x3c3   :  { %v1102_v57 = vadd.f32 %v1101_v10, %v4000_v56  ;;  %v2196_v58 = vpop.f32.mrb[5].mxu1  ;;  %v808_v10 = vadd.f32 0.2, %v797_v59  ;;  %v374_v56 = vmul.f32 0.5, %v3341_v55  ;;  %v818_v59 = vmul.f32 0.6931472, %v3458_v16 }
 0x3c4   :  { %v4003_v58 = vld [vmem:[#allocation18_spill] sm:$0xff]  ;;  %v361_v55 = vmul.f32 0.6931472, %v2523_v26  ;;  %v4007_v16 = vsub.f32 %v3408_v18, %v3397_v40 }
 0x3c5   :  { %v3575_v63 = vsel %vm649_vm3, %v1102_v57, -1e+30  ;;  %v4002_v57 = vsub.f32 %v3351_v2, %v3354_v48  ;;  %2540 = vlog2.f32 %v808_v10  ;;  %v385_v2 = vsub.f32 %v359_v39, %v374_v56 }
 0x3c6   :  { %4001 = vst [vmem:[#allocation87_spill] sm:$0xff] %v3575_v63  ;;  %1106 = vmax.xlane.f32.xlu0 %v3575_v63  ;;  %v4005_v63 = vld [vmem:[#allocation25_spill] sm:$0xff]  ;;  %v4006_v48 = vsub.f32 %v3356_v27, %v3359_v11  ;;  %v376_v11 = vmul.f32 0.5, %v3440_v35  ;;  %v386_v56 = vsub.f32 %v361_v55, %v375_v52  ;;  %v846_v18 = vsub.f32 %v818_v59, %v3400_v36 }
 0x3c7   :  { %v393_v60 = vadd.f32 %v4003_v58, %v4002_v57  ;;  %v854_v22 = vadd.f32 %v4005_v63, %v4004_v53  ;;  %v2527_v57 = vpop.eup %2526  ;;  %v1252_v63 = vmul.f32 0.8, %v2517_v44  ;;  %v820_v53 = vmul.f32 0.6931472, %v2525_v61 }
 0x3c8   :  { %v2529_v26 = vpop.eup %2528  ;;  %v363_v27 = vmul.f32 0.6931472, %v2527_v57  ;;  %v837_v57 = vmul.f32 0.5, %v3363_v19  ;;  %v838_v35 = vmul.f32 0.5, %v3367_v33  ;;  %v4009_v36 = vrot.slane %v3455_v30, %v2967_v37 }
 0x3c9   :  { %v394_v12 = vadd.f32 %v393_v60, %v4006_v48  ;;  %v855_v51 = vadd.f32 %v854_v22, %v4007_v16  ;;  %v822_v40 = vmul.f32 0.6931472, %v2529_v26  ;;  %v377_v48 = vmul.f32 0.5, %v3450_v21 }
 0x3ca   :  { %v1479_v58 = vpop.f32.mrb[6].mxu1  ;;  %191 = vadd.xlane.f32.xlu0 %v190_v20  ;;  %v2531_v20 = vpop.eup %2530  ;;  %v387_v16 = vsub.f32 %v363_v27, %v376_v11  ;;  %v378_v21 = vmul.f32 0.5, %v3462_v17  ;;  %v4010_v26 = vpack.c.bf16 %v3320_v43, %v3316_v15  ;;  %v847_v33 = vsub.f32 %v820_v53, %v3405_v8 }
 0x3cb   :  { %v1480_v10 = vadd.f32 %v1479_v58, %v4008_v1  ;;  %v2214_v39 = vpop.f32.mrb[7].mxu1  ;;  %v395_v60 = vadd.f32 %v394_v12, %v385_v2  ;;  %v2533_v44 = vpop.eup %2532  ;;  %v365_v49 = vmul.f32 0.6931472, %v2531_v20  ;;  %v4011_v37 = vmov 0.0|0.0  }
 0x3cc   :  { %v2535_v6 = vpop.eup %2534  ;;  %v824_v1 = vmul.f32 0.6931472, %v2533_v44  ;;  %v1261_v39 = vadd.f32 0.2, %v1250_v29  ;;  %v839_v17 = vmul.f32 0.5, %v3467_v54  ;;  %v848_v20 = vsub.f32 %v822_v40, %v837_v57  ;;  %v4014_v54 = vld [vmem:[#allocation80_spill] sm:$0xff] }
 0x3cd   :  { %v1483_v22 = vmax.f32 %v1480_v10, 0.0  ;;  %v396_v58 = vadd.f32 %v395_v60, %v386_v56  ;;  %v2537_v52 = vpop.eup %2536  ;;  %v367_v55 = vmul.f32 0.6931472, %v2535_v6  ;;  %v388_v2 = vsub.f32 %v365_v49, %v377_v48  ;;  %v4015_v40 = vld [vmem:[#allocation37_spill] sm:$0xff]  ;;  %v4020_v57 = vld [vmem:[#allocation42_spill] sm:$0xff] }
 0x3ce   :  { %v1857_v13 = vpop.f32.mrb[8].mxu1  ;;  %v2539_v12 = vpop.eup %2538  ;;  %v1253_v10 = vmul.f32 0.8, %v2521_v62  ;;  %v826_v6 = vmul.f32 0.6931472, %v2537_v52  ;;  %v856_v43 = vadd.f32 %v855_v51, %v846_v18  ;;  %v4012_v29 = vpack.c.bf16 %v3373_v5, %v3332_v31  ;;  %v4013_v62 = vld [vmem:[#allocation36_spill] sm:$0xff] }
 0x3cf   :  { %2224 = vmatmul.mubr.msk.f32.vlgmr.msra.gmra.mrb[8].mxu0 %vm495_vm2, %v1483_v22  ;;  %v1858_v59 = vadd.f32 %v1857_v13, %v4009_v36  ;;  %v2232_v61 = vpop.f32.mrb[9].mxu1  ;;  %v397_v19 = vadd.f32 %v396_v58, %v387_v16  ;;  %v389_v13 = vsub.f32 %v367_v55, %v378_v21  ;;  %v1262_v27 = vadd.f32 0.2, %v1251_v46  ;;  %v2541_v11 = vpop.eup %2540  ;;  %v4016_v31 = vld [vmem:[#allocation78_spill] sm:$0xff]  ;;  %v4017_v16 = vld [vmem:[#allocation75_spill] sm:$0xff] }
 0x3d0   :  { %2305 = vmatpush3.bf16.msra.mxu0 %v4010_v26  ;;  %2241 = vmatprep.mubr.msk.f32.mxu0 %vm2736_vm0, %v3935_v0  ;;  %v1263_v15 = vadd.f32 0.2, %v1252_v63  ;;  %v828_v44 = vmul.f32 0.6931472, %v2539_v12  ;;  %v849_v0 = vsub.f32 %v824_v1, %v838_v35  ;;  %v1274_v22 = vmul.f32 0.6931472, %v3492_v24 }
 0x3d1   :  { %2306 = vmatprep.subr.bf16.mxu0 %v4011_v37  ;;  %v398_v56 = vadd.f32 %v397_v19, %v388_v2  ;;  %v1861_v60 = vmax.f32 %v1858_v59, 0.0  ;;  %v840_v53 = vmul.f32 0.5, %v4013_v62  ;;  %v857_v49 = vadd.f32 %v856_v43, %v847_v33  ;;  %v4018_v58 = vld [vmem:[#allocation74_spill] sm:$0xff]  ;;  %v4021_v59 = vld [vmem:[#allocation77_spill] sm:$0xff]  ;;  %v4022_v61 = vld [vmem:[#allocation76_spill] sm:$0xff] }
 0x3d2   :  { %2542 = vlog2.f32 %v4014_v54  ;;  %v850_v46 = vsub.f32 %v826_v6, %v839_v17  ;;  %v1264_v48 = vadd.f32 0.2, %v1253_v10  ;;  %v1689_v51 = vmul.f32 1.442695, %v3578_v42  ;;  %v4025_v17 = vld [vmem:[#allocation27_spill] sm:$0xff] }
 0x3d3   :  { %v399_v8 = vadd.f32 %v398_v56, %v389_v13  ;;  %2544 = vlog2.f32 %v3601_v50  ;;  %v830_v63 = vmul.f32 0.6931472, %v2541_v11  ;;  %v841_v24 = vmul.f32 0.5, %v4015_v40  ;;  %v4026_v56 = vld [vmem:[#allocation48_spill] sm:$0xff]  ;;  %v4027_v43 = vld [vmem:[#allocation71_spill] sm:$0xff] }
 0x3d4   :  { %2308 = vmatpush3.bf16.msra.mxu0 %v4012_v29  ;;  %v858_v18 = vadd.f32 %v857_v49, %v848_v20  ;;  %2546 = vlog2.f32 %v1261_v39  ;;  %v1302_v5 = vsub.f32 %v1274_v22, %v4016_v31  ;;  %v4019_v1 = vsub.f32 %v4017_v16, %v4018_v58  ;;  %v4024_v39 = vld [vmem:[#allocation70_spill] sm:$0xff]  ;;  %v4028_v22 = vld [vmem:[#allocation19_spill] sm:$0xff]  ;;  %v4029_v49 = vld [vmem:[#allocation72_spill] sm:$0xff] }
 0x3d5   :  { %400 = vadd.xlane.f32.xlu0 %v399_v8  ;;  %2548 = vlog2.f32 %v1262_v27  ;;  %v1691_v50 = vmul.f32 1.442695, %v3581_v32  ;;  %v851_v52 = vsub.f32 %v828_v44, %v840_v53  ;;  %v1693_v36 = vmul.f32 1.442695, %v3585_v38  ;;  %v4030_v40 = vld [vmem:[#allocation51_spill] sm:$0xff]  ;;  %v4031_v58 = vld [vmem:[#allocation30_spill] sm:$0xff] }
 0x3d6   :  { %v1310_v35 = vadd.f32 %v4020_v57, %v4019_v1  ;;  %v859_v42 = vadd.f32 %v858_v18, %v849_v0  ;;  %2550 = vlog2.f32 %v1263_v15  ;;  %v4023_v55 = vsub.f32 %v4021_v59, %v4022_v61 }
 0x3d7   :  { %2242 = vmatmul.mubr.msk.f32.vlgmr.msra.gmra.mrb[10].mxu0 %vm495_vm2, %v1861_v60  ;;  %2552 = vlog2.f32 %v1264_v48  ;;  %v1695_v2 = vmul.f32 1.442695, %v3588_v4  ;;  %v852_v12 = vsub.f32 %v830_v63, %v841_v24  ;;  %v1697_v19 = vmul.f32 1.442695, %v3611_v47 }
 0x3d8   :  { %v1311_v21 = vadd.f32 %v1310_v35, %v4023_v55  ;;  %v860_v26 = vadd.f32 %v859_v42, %v850_v46  ;;  %2554 = vpow2.f32 %v1689_v51  ;;  %v1715_v33 = vadd.f32 0.2, %v3526_v34 }
 0x3d9   :  { %2556 = vpow2.f32 %v1691_v50  ;;  %v1292_v38 = vmul.f32 0.5, %v4024_v39  ;;  %v1293_v27 = vmul.f32 0.5, %v4025_v17  ;;  %v1294_v20 = vmul.f32 0.5, %v4026_v56  ;;  %v4034_v56 = vld [vmem:[#allocation47_spill] sm:$0xff] }
 0x3da   :  { %v1312_v32 = vadd.f32 %v1311_v21, %v1302_v5  ;;  %v861_v10 = vadd.f32 %v860_v26, %v851_v52  ;;  %2558 = vpow2.f32 %v1693_v36  ;;  %v1726_v34 = vmul.f32 0.6931472, %v3524_v3  ;;  %v4032_v36 = vld [vmem:[#allocation73_spill] sm:$0xff] }
 0x3db   :  { %2560 = vpow2.f32 %v1695_v2  ;;  %v1745_v15 = vmul.f32 0.5, %v4027_v43  ;;  %v1295_v29 = vmul.f32 0.5, %v4028_v22  ;;  %v1728_v53 = vmul.f32 0.6931472, %v3533_v25 }
 0x3dc   :  { %v2543_v13 = vpop.eup %2542  ;;  %v862_v6 = vadd.f32 %v861_v10, %v852_v12  ;;  %2562 = vpow2.f32 %v1697_v19  ;;  %v1746_v54 = vmul.f32 0.5, %v4029_v49  ;;  %v1296_v3 = vmul.f32 0.5, %v4030_v40 }
 0x3dd   :  { %v2545_v4 = vpop.eup %2544  ;;  %v1276_v11 = vmul.f32 0.6931472, %v2543_v13  ;;  %2564 = vlog2.f32 %v1715_v33  ;;  %v1756_v5 = vsub.f32 %v1726_v34, %v1745_v15  ;;  %v1297_v1 = vmul.f32 0.5, %v4031_v58 }
 0x3de   :  { %v2547_v47 = vpop.eup %2546  ;;  %863 = vadd.xlane.f32.xlu0 %v862_v6  ;;  %v1278_v60 = vmul.f32 0.6931472, %v2545_v4  ;;  %v1757_v42 = vsub.f32 %v1728_v53, %v1746_v54  ;;  %v1747_v59 = vmul.f32 0.5, %v4032_v36  ;;  %v1730_v55 = vmul.f32 0.6931472, %v3546_v9  ;;  %v4038_v36 = vld [vmem:[#allocation86_spill] sm:$0xff] }
 0x3df   :  { %v2549_v44 = vpop.eup %2548  ;;  %v1280_v0 = vmul.f32 0.6931472, %v2547_v47  ;;  %v1303_v8 = vsub.f32 %v1276_v11, %v1292_v38  ;;  %v4033_v38 = vld [vmem:[#allocation57_spill] sm:$0xff]  ;;  %v1748_v9 = vmul.f32 0.5, %v4034_v56  ;;  %v1749_v22 = vmul.f32 0.5, %v3551_v45 }
 0x3e0   :  { %v2551_v62 = vpop.eup %2550  ;;  %v1282_v46 = vmul.f32 0.6931472, %v2549_v44  ;;  %v1304_v48 = vsub.f32 %v1278_v60, %v1293_v27  ;;  %v1766_v13 = vadd.f32 %v4033_v38, %v1756_v5  ;;  %v1758_v43 = vsub.f32 %v1730_v55, %v1747_v59  ;;  %v4039_v55 = vld [vmem:[#allocation87_spill] sm:$0xff] }
 0x3e1   :  { %v2553_v51 = vpop.eup %2552  ;;  %v1284_v63 = vmul.f32 0.6931472, %v2551_v62  ;;  %v1305_v24 = vsub.f32 %v1280_v0, %v1294_v20  ;;  %v1313_v18 = vadd.f32 %v1312_v32, %v1303_v8  ;;  %v1750_v8 = vmul.f32 0.5, %v3555_v41  ;;  %v4042_v38 = vld [vmem:[#allocation43_spill] sm:$0xff] }
 0x3e2   :  { %v2555_v31 = vpop.eup %2554  ;;  %v1286_v16 = vmul.f32 0.6931472, %v2553_v51  ;;  %v1306_v35 = vsub.f32 %v1282_v46, %v1295_v29  ;;  %v1767_v15 = vadd.f32 %v1766_v13, %v1757_v42  ;;  %v1751_v49 = vmul.f32 0.5, %v3559_v23 }
 0x3e3   :  { %v2557_v57 = vpop.eup %2556  ;;  %v1314_v50 = vadd.f32 %v1313_v18, %v1304_v48  ;;  %v1705_v52 = vmul.f32 0.8, %v2555_v31  ;;  %v1307_v2 = vsub.f32 %v1284_v63, %v1296_v3  ;;  %v1752_v40 = vmul.f32 0.5, %v3563_v14  ;;  %v4037_v14 = vld [vmem:[#allocation85_spill] sm:$0xff] }
 0x3e4   :  { %v2559_v25 = vpop.eup %2558  ;;  %v1706_v61 = vmul.f32 0.8, %v2557_v57  ;;  %v1308_v32 = vsub.f32 %v1286_v16, %v1297_v1  ;;  %v1768_v0 = vadd.f32 %v1767_v15, %v1758_v43  ;;  %v1753_v45 = vmul.f32 0.5, %v3570_v28  ;;  %v3681_v28 = vpop.xlane.xlu0 %651  ;;  %v4043_v43 = vld [vmem:[#allocation20_spill] sm:$0xff] }
 0x3e5   :  { %v2561_v21 = vpop.eup %2560  ;;  %v1315_v12 = vadd.f32 %v1314_v50, %v1305_v24  ;;  %v1707_v26 = vmul.f32 0.8, %v2559_v25  ;;  %v1716_v19 = vadd.f32 0.2, %v1705_v52  ;;  %v4035_v52 = vld [vmem:[#allocation31_spill] sm:$0xff]  ;;  %v4036_v25 = vld [vmem:[#allocation84_spill] sm:$0xff]  ;;  %v2313_v59 = vpack.c.bf16 %v4038_v36, %v4037_v14 }
 0x3e6   :  { %v2563_v33 = vpop.eup %2562  ;;  %v1708_v10 = vmul.f32 0.8, %v2561_v21  ;;  %v1717_v39 = vadd.f32 0.2, %v1706_v61  ;;  %v2310_v42 = vpack.c.bf16 %v4036_v25, %v4035_v52  ;;  %v1865_v13 = vrot.slane %v3455_v30, %v4042_v38  ;;  %v4055_v25 = vld [vmem:[#allocation69_spill] sm:$0xff]  ;;  %v4056_v14 = vld [vmem:[#allocation68_spill] sm:$0xff] }
 0x3e7   :  { %v2565_v6 = vpop.eup %2564  ;;  %v1316_v17 = vadd.f32 %v1315_v12, %v1306_v35  ;;  %v1709_v27 = vmul.f32 0.8, %v2563_v33  ;;  %v1718_v4 = vadd.f32 0.2, %v1707_v26  ;;  %2566 = vlog2.f32 %v1716_v19  ;;  %v4040_v26 = vld [vmem:[#allocation58_spill] sm:$0xff] }
 0x3e8   :  { %v1719_v11 = vadd.f32 0.2, %v1708_v10  ;;  %2568 = vlog2.f32 %v1717_v39  ;;  %v1732_v34 = vmul.f32 0.6931472, %v2565_v6  ;;  %2311 = vmatpush3.bf16.msra.mxu1 %v2310_v42  ;;  %v1487_v19 = vrot.slane %v3178_v7, %v4040_v26 }
 0x3e9   :  { %v1317_v20 = vadd.f32 %v1316_v17, %v1307_v2  ;;  %v1720_v47 = vadd.f32 0.2, %v1709_v27  ;;  %2570 = vlog2.f32 %v1718_v4  ;;  %2312 = vmatprep.subr.bf16.mxu1 %v4011_v37  ;;  %v251_v15 = vmul.f32 %v4043_v43, %v4043_v43  ;;  %v4082_v37 = vld [vmem:[#allocation79_spill] sm:$0xff] }
 0x3ea   :  { %2572 = vlog2.f32 %v1719_v11  ;;  %v1759_v44 = vsub.f32 %v1732_v34, %v1748_v9  ;;  %v1626_v42 = vmul.f32 %v4055_v25, %v4055_v25  ;;  %v4069_v25 = vld [vmem:[#allocation49_spill] sm:$0xff] }
 0x3eb   :  { %v1318_v60 = vadd.f32 %v1317_v20, %v1308_v32  ;;  %2574 = vlog2.f32 %v1720_v47 }
 0x3ec   :  { %v1769_v54 = vadd.f32 %v1768_v0, %v1759_v44  ;;  %2314 = vmatpush3.bf16.msra.mxu1 %v2313_v59 }
 0x3ed   :  { %1319 = vadd.xlane.f32.xlu0 %v1318_v60  ;;  %v4044_v60 = vld [vmem:[#allocation38_spill] sm:$0xff] }
 0x3ee   :  { %v712_v44 = vmul.f32 %v4044_v60, %v4044_v60 }
 0x3f1   :  { %v2567_v29 = vpop.eup %2566 }
 0x3f2   :  { %v2569_v62 = vpop.eup %2568  ;;  %v1734_v53 = vmul.f32 0.6931472, %v2567_v29  ;;  %v4045_v29 = vld [vmem:[#allocation39_spill] sm:$0xff] }
 0x3f3   :  { %v2571_v46 = vpop.eup %2570  ;;  %v1736_v48 = vmul.f32 0.6931472, %v2569_v62  ;;  %v4046_v62 = vld [vmem:[#allocation22_spill] sm:$0xff] }
 0x3f4   :  { %v2573_v51 = vpop.eup %2572  ;;  %v1738_v63 = vmul.f32 0.6931472, %v2571_v46  ;;  %v1760_v3 = vsub.f32 %v1734_v53, %v1749_v22  ;;  %v261_v53 = vadd.f32 %v4046_v62, %v251_v15  ;;  %v4063_v62 = vld [vmem:[#allocation26_spill] sm:$0xff] }
 0x3f5   :  { %v2575_v24 = vpop.eup %2574  ;;  %v1740_v18 = vmul.f32 0.6931472, %v2573_v51  ;;  %v1761_v31 = vsub.f32 %v1736_v48, %v1750_v8  ;;  %v713_v8 = vmul.f32 %v4045_v29, %v4045_v29  ;;  %v4048_v48 = vld [vmem:[#allocation41_spill] sm:$0xff] }
 0x3f6   :  { %v1742_v5 = vmul.f32 0.6931472, %v2575_v24  ;;  %v1762_v16 = vsub.f32 %v1738_v63, %v1751_v49  ;;  %v1770_v41 = vadd.f32 %v1769_v54, %v1760_v3  ;;  %v4047_v49 = vld [vmem:[#allocation40_spill] sm:$0xff]  ;;  %v714_v51 = vmul.f32 %v4048_v48, %v4048_v48 }
 0x3f7   :  { %v1763_v58 = vsub.f32 %v1740_v18, %v1752_v40  ;;  %v722_v54 = vadd.f32 %v4047_v49, %v712_v44  ;;  %v4049_v40 = vld [vmem:[#allocation53_spill] sm:$0xff]  ;;  %v4050_v18 = vld [vmem:[#allocation54_spill] sm:$0xff]  ;;  %v4062_v44 = vld [vmem:[#allocation24_spill] sm:$0xff] }
 0x3f8   :  { %v1771_v1 = vadd.f32 %v1770_v41, %v1761_v31  ;;  %v1764_v57 = vsub.f32 %v1742_v5, %v1753_v45  ;;  %v1168_v3 = vmul.f32 %v4049_v40, %v4049_v40  ;;  %v1169_v31 = vmul.f32 %v4050_v18, %v4050_v18  ;;  %v4051_v45 = vld [vmem:[#allocation56_spill] sm:$0xff]  ;;  %v4052_v41 = vld [vmem:[#allocation55_spill] sm:$0xff]  ;;  %v4065_v40 = vld [vmem:[#allocation34_spill] sm:$0xff] }
 0x3f9   :  { %v723_v24 = vadd.f32 %v722_v54, %v713_v8 }
 0x3fa   :  { %v1772_v23 = vadd.f32 %v1771_v1, %v1762_v16  ;;  %v1170_v16 = vmul.f32 %v4051_v45, %v4051_v45  ;;  %v4053_v1 = vld [vmem:[#allocation66_spill] sm:$0xff] }
 0x3fb   :  { %v724_v5 = vadd.f32 %v723_v24, %v714_v51 }
 0x3fc   :  { %v1773_v35 = vadd.f32 %v1772_v23, %v1763_v58  ;;  %v1178_v58 = vadd.f32 %v4052_v41, %v1168_v3  ;;  %v4067_v41 = vld [vmem:[#allocation62_spill] sm:$0xff] }
 0x3fe   :  { %v1774_v50 = vadd.f32 %v1773_v35, %v1764_v57  ;;  %v1624_v57 = vmul.f32 %v4053_v1, %v4053_v1  ;;  %v1179_v23 = vadd.f32 %v1178_v58, %v1169_v31  ;;  %v4054_v35 = vld [vmem:[#allocation67_spill] sm:$0xff]  ;;  %v4066_v31 = vld [vmem:[#allocation46_spill] sm:$0xff] }
 0x400   :  { %1775 = vadd.xlane.f32.xlu0 %v1774_v50  ;;  %v1625_v50 = vmul.f32 %v4054_v35, %v4054_v35  ;;  %v1180_v52 = vadd.f32 %v1179_v23, %v1170_v16  ;;  %v1634_v36 = vadd.f32 %v4056_v14, %v1624_v57  ;;  %v4068_v57 = vld [vmem:[#allocation35_spill] sm:$0xff] }
 0x402   :  { %v1635_v59 = vadd.f32 %v1634_v36, %v1625_v50 }
 0x453   :  { %v1107_v61 = vpop.xlane.xlu0 %1106 }
 0x454   :  { %v1108_v21 = vsub.f32 %v4039_v55, %v1107_v61  ;;  %v3728_v61 = vadd.f32 %v1635_v59, %v1626_v42  ;;  %v4057_v55 = vld [vmem:[#allocation21_spill] sm:$0xff]  ;;  %v4070_v59 = vld [vmem:[#allocation63_spill] sm:$0xff] }
 0x456   :  { %v1109_v2 = vmul.f32 1.442695, %v1108_v21  ;;  %v4058_v21 = vld [vmem:[#allocation23_spill] sm:$0xff] }
 0x457   :  { %v3694_v11 = vpop.xlane.xlu0 %191 }
 0x458   :  { %2576 = vpow2.f32 %v1109_v2  ;;  %v4059_v2 = vld [vmem:[#allocation32_spill] sm:$0xff] }
 0x462   :  { %v2577_v12 = vpop.eup %2576  ;;  %v3696_v7 = vpop.xlane.xlu0 %400 }
 0x463   :  { %1111 = vadd.xlane.f32.xlu0 %v2577_v12 }
 0x46b   :  { %v3698_v56 = vpop.xlane.xlu0 %863 }
 0x47a   :  { %v3700_v9 = vpop.xlane.xlu0 %1319 }
 0x48d   :  { %v3702_v20 = vpop.xlane.xlu0 %1775 }
 0x4a2   :  { %v1557_v33 = vpop.f32.mrb[8].mxu0 }
 0x4a3   :  { %v1558_v32 = vadd.f32 %v1557_v33, %v1487_v19  ;;  %v2225_v10 = vpop.f32.mrb[9].mxu0  ;;  %v4060_v19 = vld [vmem:[#allocation33_spill] sm:$0xff] }
 0x4a4   :  { %v4061_v10 = vld [vmem:[#allocation28_spill] sm:$0xff] }
 0x4a5   :  { %v3688_v39 = vsel %vm649_vm3, %v1558_v32, -1e+30 }
 0x4a6   :  { %1562 = vmax.xlane.f32.xlu1 %v3688_v39 }
 0x4aa   :  { %v1935_v6 = vpop.f32.mrb[10].mxu0 }
 0x4ab   :  { %v1936_v17 = vadd.f32 %v1935_v6, %v1865_v13  ;;  %v2243_v27 = vpop.f32.mrb[11].mxu0 }
 0x4ad   :  { %v1939_v4 = vmax.f32 %v1936_v17, 0.0 }
 0x4af   :  { %2253 = vmatmul.mubr.msk.f32.vlgmr.msra.gmra.mrb[10].mxu1 %vm495_vm2, %v1939_v4 }
 0x4f0   :  { %v1112_v47 = vpop.xlane.xlu0 %1111 }
 0x4f1   :  { %2578 = vrcp.f32 %v1112_v47 }
 0x4f2   :  { %2580 = vrcp.f32 %v4057_v55 }
 0x4f3   :  { %2582 = vrcp.f32 %v4058_v21 }
 0x4f4   :  { %2584 = vrcp.f32 %v4059_v2 }
 0x4f5   :  { %2586 = vrcp.f32 %v4060_v19 }
 0x4f6   :  { %2588 = vrcp.f32 %v4061_v10 }
 0x4fb   :  { %v2579_v34 = vpop.eup %2578 }
 0x4fc   :  { %v1114_v0 = vmul.f32 %v2579_v34, %v1112_v47 }
 0x4fe   :  { %v1115_v22 = vsub.f32 2.0, %v1114_v0 }
 0x500   :  { %v1116_v46 = vmul.f32 %v2579_v34, %v1115_v22 }
 0x502   :  { %v1117_v63 = vmul.f32 %v2577_v12, %v1116_v46  ;;  %v2581_v12 = vpop.eup %2580  ;;  %v4064_v46 = vld [vmem:[#allocation45_spill] sm:$0xff] }
 0x503   :  { %v154_v33 = vmul.f32 %v2581_v12, %v4057_v55  ;;  %v2583_v32 = vpop.eup %2582 }
 0x504   :  { %1119 = vst [vmem:[#allocation9 + $0x8] sm:$0xff] %v1117_v63  ;;  %v155_v38 = vmul.f32 %v2583_v32, %v4058_v21  ;;  %v2585_v6 = vpop.eup %2584 }
 0x505   :  { %v165_v13 = vsub.f32 2.0, %v154_v33  ;;  %v156_v17 = vmul.f32 %v2585_v6, %v4059_v2  ;;  %v2587_v47 = vpop.eup %2586  ;;  %v4071_v2 = vld [vmem:[#allocation52_spill] sm:$0xff] }
 0x506   :  { %v166_v27 = vsub.f32 2.0, %v155_v38  ;;  %v2589_v34 = vpop.eup %2588  ;;  %v157_v43 = vmul.f32 %v2587_v47, %v4060_v19 }
 0x507   :  { %v176_v4 = vmul.f32 %v2581_v12, %v165_v13  ;;  %v167_v15 = vsub.f32 2.0, %v156_v17  ;;  %v158_v22 = vmul.f32 %v2589_v34, %v4061_v10  ;;  %v4073_v10 = vld [vmem:[#allocation50_spill] sm:$0xff]  ;;  %v4074_v17 = vld [vmem:[#allocation64_spill] sm:$0xff] }
 0x508   :  { %v177_v60 = vmul.f32 %v2583_v32, %v166_v27  ;;  %v168_v29 = vsub.f32 2.0, %v157_v43  ;;  %v4075_v43 = vld [vmem:[#allocation81_spill] sm:$0xff] }
 0x509   :  { %v240_v0 = vmul.f32 %v4062_v44, %v176_v4  ;;  %v178_v8 = vmul.f32 %v2585_v6, %v167_v15  ;;  %v704_v48 = vmul.f32 %v4064_v46, %v176_v4  ;;  %v169_v51 = vsub.f32 2.0, %v158_v22  ;;  %v4076_v22 = vld [vmem:[#allocation44_spill] sm:$0xff] }
 0x50a   :  { %v241_v49 = vmul.f32 %v4063_v62, %v177_v60  ;;  %v179_v63 = vmul.f32 %v2587_v47, %v168_v29  ;;  %v705_v45 = vmul.f32 %v4066_v31, %v177_v60  ;;  %v1160_v58 = vmul.f32 %v4067_v41, %v176_v4  ;;  %v4079_v41 = vld [vmem:[#allocation60_spill] sm:$0xff] }
 0x50b   :  { %v252_v54 = vmul.f32 %v240_v0, %v240_v0  ;;  %v242_v3 = vmul.f32 %v4065_v40, %v178_v8  ;;  %v715_v16 = vmul.f32 %v704_v48, %v704_v48  ;;  %v180_v1 = vmul.f32 %v2589_v34, %v169_v51 }
 0x50c   :  { %v253_v24 = vmul.f32 %v241_v49, %v241_v49  ;;  %v243_v23 = vmul.f32 %v4068_v57, %v179_v63  ;;  %v706_v42 = vmul.f32 %v4069_v25, %v178_v8  ;;  %v716_v14 = vmul.f32 %v705_v45, %v705_v45 }
 0x50d   :  { %v262_v18 = vadd.f32 %v261_v53, %v252_v54  ;;  %v254_v35 = vmul.f32 %v242_v3, %v242_v3  ;;  %v725_v36 = vadd.f32 %v724_v5, %v715_v16  ;;  %v1161_v55 = vmul.f32 %v4070_v59, %v177_v60  ;;  %v4072_v53 = vld [vmem:[#allocation29_spill] sm:$0xff]  ;;  %v4078_v3 = vld [vmem:[#allocation82_spill] sm:$0xff] }
 0x50e   :  { %v1171_v21 = vmul.f32 %v1160_v58, %v1160_v58  ;;  %v1616_v12 = vmul.f32 %v4071_v2, %v176_v4  ;;  %v244_v19 = vmul.f32 %v4072_v53, %v180_v1  ;;  %v255_v33 = vmul.f32 %v243_v23, %v243_v23  ;;  %v4077_v54 = vld [vmem:[#allocation65_spill] sm:$0xff] }
 0x50f   :  { %v263_v50 = vadd.f32 %v262_v18, %v253_v24  ;;  %v707_v38 = vmul.f32 %v4073_v10, %v179_v63  ;;  %v717_v13 = vmul.f32 %v706_v42, %v706_v42  ;;  %v726_v6 = vadd.f32 %v725_v36, %v716_v14  ;;  %v4081_v42 = vld [vmem:[#allocation61_spill] sm:$0xff] }
 0x510   :  { %v1162_v27 = vmul.f32 %v4074_v17, %v178_v8  ;;  %v1172_v47 = vmul.f32 %v1161_v55, %v1161_v55  ;;  %v1181_v34 = vadd.f32 %v1180_v52, %v1171_v21  ;;  %v1617_v15 = vmul.f32 %v4075_v43, %v177_v60 }
 0x511   :  { %v264_v32 = vadd.f32 %v263_v50, %v254_v35  ;;  %v1627_v5 = vmul.f32 %v1616_v12, %v1616_v12  ;;  %v1943_v44 = vrot.slane %v3455_v30, %v4040_v26  ;;  %v256_v0 = vmul.f32 %v244_v19, %v244_v19  ;;  %v4080_v35 = vld [vmem:[#allocation83_spill] sm:$0xff] }
 0x512   :  { %v708_v29 = vmul.f32 %v4076_v22, %v180_v1  ;;  %v718_v62 = vmul.f32 %v707_v38, %v707_v38  ;;  %v727_v49 = vadd.f32 %v726_v6, %v717_v13  ;;  %v1163_v46 = vmul.f32 %v4077_v54, %v179_v63 }
 0x513   :  { %v265_v4 = vadd.f32 %v264_v32, %v255_v33  ;;  %v1173_v48 = vmul.f32 %v1162_v27, %v1162_v27  ;;  %v1182_v40 = vadd.f32 %v1181_v34, %v1172_v47  ;;  %v1618_v24 = vmul.f32 %v4078_v3, %v178_v8 }
 0x514   :  { %v1628_v52 = vmul.f32 %v1617_v15, %v1617_v15  ;;  %v1637_v60 = vadd.f32 %v3728_v61, %v1627_v5  ;;  %v719_v30 = vmul.f32 %v708_v29, %v708_v29  ;;  %v728_v16 = vadd.f32 %v727_v49, %v718_v62 }
 0x515   :  { %v266_v45 = vadd.f32 %v265_v4, %v256_v0  ;;  %v1164_v58 = vmul.f32 %v4079_v41, %v180_v1  ;;  %v1174_v57 = vmul.f32 %v1163_v46, %v1163_v46  ;;  %v1183_v23 = vadd.f32 %v1182_v40, %v1173_v48 }
 0x516   :  { %v1619_v50 = vmul.f32 %v4080_v35, %v179_v63  ;;  %v1629_v25 = vmul.f32 %v1618_v24, %v1618_v24  ;;  %v1638_v8 = vadd.f32 %v1637_v60, %v1628_v52  ;;  %v653_v61 = vsub.f32 %v4081_v42, %v3681_v28 }
 0x517   :  { %v729_v36 = vadd.f32 %v728_v16, %v719_v30  ;;  %v1175_v59 = vmul.f32 %v1164_v58, %v1164_v58  ;;  %v1184_v55 = vadd.f32 %v1183_v23, %v1174_v57  ;;  %v1620_v21 = vmul.f32 %v4082_v37, %v180_v1 }
 0x518   :  { %v1630_v2 = vmul.f32 %v1619_v50, %v1619_v50  ;;  %v1639_v12 = vadd.f32 %v1638_v8, %v1629_v25  ;;  %v654_v53 = vmul.f32 1.442695, %v653_v61  ;;  %v402_v34 = vrot.slane %v3696_v7, 4 }
 0x519   :  { %v1185_v33 = vadd.f32 %v1184_v55, %v1175_v59  ;;  %v1631_v63 = vmul.f32 %v1620_v21, %v1620_v21  ;;  %v865_v15 = vrot.slane %v3698_v56, 4  ;;  %v1321_v22 = vrot.slane %v3700_v9, 4 }
 0x51a   :  { %v1640_v32 = vadd.f32 %v1639_v12, %v1630_v2  ;;  %2590 = vpow2.f32 %v654_v53  ;;  %v403_v43 = vadd.f32 %v402_v34, %v3696_v7  ;;  %v1777_v46 = vrot.slane %v3702_v20, 4 }
 0x51b   :  { %v866_v4 = vadd.f32 %v865_v15, %v3698_v56  ;;  %v1322_v54 = vadd.f32 %v1321_v22, %v3700_v9 }
 0x51c   :  { %v1641_v28 = vadd.f32 %v1640_v32, %v1631_v63  ;;  %v404_v0 = vrot.slane %v403_v43, 2  ;;  %v1778_v52 = vadd.f32 %v1777_v46, %v3702_v20 }
 0x51d   :  { %v867_v49 = vrot.slane %v866_v4, 2  ;;  %v1323_v24 = vrot.slane %v1322_v54, 2 }
 0x51e   :  { %v405_v48 = vadd.f32 %v404_v0, %v403_v43  ;;  %v1779_v41 = vrot.slane %v1778_v52, 2 }
 0x51f   :  { %v868_v60 = vadd.f32 %v867_v49, %v866_v4  ;;  %v1324_v57 = vadd.f32 %v1323_v24, %v1322_v54 }
 0x520   :  { %v406_v56 = vrot.slane %v405_v48, 1  ;;  %v1780_v59 = vadd.f32 %v1779_v41, %v1778_v52 }
 0x521   :  { %v869_v58 = vrot.slane %v868_v60, 1 }
 0x522   :  { %v407_v9 = vadd.f32 %v406_v56, %v405_v48 }
 0x524   :  { %v3768_v38 = vpop.eup %2590 }
 0x533   :  { %v1563_v14 = vpop.xlane.xlu1 %1562 }
 0x534   :  { %v1564_v19 = vsub.f32 %v3688_v39, %v1563_v14  ;;  %v193_v39 = vrot.slane %v3694_v11, 4  ;;  %v870_v14 = vadd.f32 %v869_v58, %v868_v60 }
 0x536   :  { %v1565_v10 = vmul.f32 1.442695, %v1564_v19  ;;  %v194_v13 = vadd.f32 %v193_v39, %v3694_v11 }
 0x538   :  { %2592 = vpow2.f32 %v1565_v10  ;;  %v195_v6 = vrot.slane %v194_v13, 2 }
 0x53a   :  { %v196_v17 = vadd.f32 %v195_v6, %v194_v13 }
 0x53c   :  { %v197_v27 = vrot.slane %v196_v17, 1 }
 0x53e   :  { %v198_v47 = vadd.f32 %v197_v27, %v196_v17 }
 0x540   :  { %2315 = vpush %v198_v47 }
 0x542   :  { %v3771_v1 = vpop.eup %2592 }
 0x571   :  { %s2316_s2 = spop %2315 }
 0x572   :  { %s245_s6 = ssub.f32 -1712.9014, %s2316_s2 }
 0x582   :  { %v2013_v51 = vpop.f32.mrb[10].mxu1 }
 0x583   :  { %v2014_v18 = vadd.f32 %v2013_v51, %v1943_v44  ;;  %v2254_v31 = vpop.f32.mrb[11].mxu1 }
 0x585   :  { %v2017_v26 = vsel %vm649_vm3, %v2014_v18, -1e+30 }
 0x586   :  { %2018 = vmax.xlane.f32.xlu1 %v2017_v26 }
 0x58a   :  { %267 = vadd.xlane.f32.xlu1 %v266_v45 }
 0x58e   :  { %730 = vadd.xlane.f32.xlu1 %v729_v36  ;;  %v1325_v36 = vrot.slane %v1324_v57, 1 }
 0x590   :  { %v1326_v19 = vadd.f32 %v1325_v36, %v1324_v57 }
 0x592   :  { %1186 = vadd.xlane.f32.xlu1 %v1185_v33  ;;  %v1781_v33 = vrot.slane %v1780_v59, 1 }
 0x594   :  { %v1782_v39 = vadd.f32 %v1781_v33, %v1780_v59 }
 0x596   :  { %1642 = vadd.xlane.f32.xlu1 %v1641_v28 }
 0x59a   :  { %656 = vadd.xlane.f32.xlu1 %v3768_v38 }
 0x59e   :  { %1567 = vadd.xlane.f32.xlu1 %v3771_v1 }
 0x613   :  { %v2019_v5 = vpop.xlane.xlu1 %2018 }
 0x614   :  { %v2020_v44 = vsub.f32 %v2017_v26, %v2019_v5 }
 0x616   :  { %v2021_v29 = vmul.f32 1.442695, %v2020_v44 }
 0x617   :  { %v268_v11 = vpop.xlane.xlu1 %267 }
 0x618   :  { %2594 = vpow2.f32 %v2021_v29  ;;  %v269_v62 = vrot.slane %v268_v11, 4 }
 0x61a   :  { %v270_v7 = vadd.f32 %v269_v62, %v268_v11 }
 0x61b   :  { %v731_v51 = vpop.xlane.xlu1 %730 }
 0x61c   :  { %v271_v40 = vrot.slane %v270_v7, 2  ;;  %v732_v3 = vrot.slane %v731_v51, 4 }
 0x61e   :  { %v733_v18 = vadd.f32 %v732_v3, %v731_v51  ;;  %v272_v31 = vadd.f32 %v271_v40, %v270_v7 }
 0x61f   :  { %v1187_v45 = vpop.xlane.xlu1 %1186 }
 0x620   :  { %v734_v30 = vrot.slane %v733_v18, 2  ;;  %v1188_v26 = vrot.slane %v1187_v45, 4  ;;  %v273_v16 = vrot.slane %v272_v31, 1 }
 0x622   :  { %v3784_v23 = vpop.eup %2594  ;;  %v1189_v35 = vadd.f32 %v1188_v26, %v1187_v45  ;;  %v274_v50 = vadd.f32 %v273_v16, %v272_v31  ;;  %v735_v25 = vadd.f32 %v734_v30, %v733_v18 }
 0x623   :  { %v1643_v8 = vpop.xlane.xlu1 %1642  ;;  %2023 = vadd.xlane.f32.xlu0 %v3784_v23 }
 0x624   :  { %v1190_v20 = vrot.slane %v1189_v35, 2  ;;  %v1644_v42 = vrot.slane %v1643_v8, 4  ;;  %2317 = vpush %v274_v50  ;;  %v736_v61 = vrot.slane %v735_v25, 1 }
 0x625   :  { %2319 = vpush %v407_v9 }
 0x626   :  { %v1645_v55 = vadd.f32 %v1644_v42, %v1643_v8  ;;  %v737_v37 = vadd.f32 %v736_v61, %v735_v25  ;;  %v1191_v21 = vadd.f32 %v1190_v20, %v1189_v35 }
 0x627   :  { %v657_v2 = vpop.xlane.xlu1 %656 }
 0x628   :  { %v1646_v12 = vrot.slane %v1645_v55, 2  ;;  %2596 = vrcp.f32 %v657_v2  ;;  %2321 = vpush %v737_v37  ;;  %v1192_v53 = vrot.slane %v1191_v21, 1 }
 0x629   :  { %2323 = vpush %v870_v14 }
 0x62a   :  { %v1193_v63 = vadd.f32 %v1192_v53, %v1191_v21  ;;  %v1647_v32 = vadd.f32 %v1646_v12, %v1645_v55 }
 0x62b   :  { %v1568_v10 = vpop.xlane.xlu1 %1567 }
 0x62c   :  { %2598 = vrcp.f32 %v1568_v10  ;;  %2325 = vpush %v1193_v63  ;;  %v1648_v28 = vrot.slane %v1647_v32, 1 }
 0x62d   :  { %2327 = vpush %v1326_v19 }
 0x62e   :  { %v1649_v13 = vadd.f32 %v1648_v28, %v1647_v32 }
 0x630   :  { %2329 = vpush %v1649_v13 }
 0x631   :  { %2331 = vpush %v1782_v39 }
 0x632   :  { %v2597_v6 = vpop.eup %2596 }
 0x633   :  { %v659_v17 = vmul.f32 %v2597_v6, %v657_v2 }
 0x635   :  { %v660_v27 = vsub.f32 2.0, %v659_v17 }
 0x636   :  { %v2599_v47 = vpop.eup %2598 }
 0x637   :  { %v661_v34 = vmul.f32 %v2597_v6, %v660_v27  ;;  %v1570_v43 = vmul.f32 %v2599_v47, %v1568_v10 }
 0x639   :  { %v662_v15 = vmul.f32 %v3768_v38, %v661_v34  ;;  %v1571_v5 = vsub.f32 2.0, %v1570_v43 }
 0x63b   :  { %663 = vst [vmem:[#allocation9] sm:$0xff] %v662_v15  ;;  %v1572_v44 = vmul.f32 %v2599_v47, %v1571_v5 }
 0x63d   :  { %v1573_v0 = vmul.f32 %v3771_v1, %v1572_v44 }
 0x63f   :  { %1575 = vst [vmem:[#allocation9 + $0x10] sm:$0xff] %v1573_v0 }
 0x655   :  { %s2318_s7 = spop %2317 }
 0x656   :  { %s276_s8 = smul.f32 0.5, %s2318_s7  ;;  %s2320_s9 = spop %2319 }
 0x657   :  { %s409_s10 = sadd.f32 -4.9355016, %s2320_s9 }
 0x658   :  { %s277_s11 = ssub.f32 %s245_s6, %s276_s8 }
 0x659   :  { %411 = sst [smem:[#allocation10]] %s409_s10  ;;  %s2322_s12 = spop %2321 }
 0x65a   :  { %279 = sst [smem:[#allocation11]] %s277_s11  ;;  %s739_s13 = smul.f32 0.5, %s2322_s12 }
 0x65b   :  { %s2324_s14 = spop %2323 }
 0x65c   :  { %s740_s15 = ssub.f32 %s245_s6, %s739_s13 }
 0x65d   :  { %s872_s16 = sadd.f32 -4.9355016, %s2324_s14  ;;  %s2326_s17 = spop %2325 }
 0x65e   :  { %742 = sst [smem:[#allocation11 + $0x1]] %s740_s15  ;;  %s1195_s1 = smul.f32 0.5, %s2326_s17 }
 0x65f   :  { %874 = sst [smem:[#allocation10 + $0x1]] %s872_s16  ;;  %s2328_s18 = spop %2327 }
 0x660   :  { %s1196_s19 = ssub.f32 %s245_s6, %s1195_s1 }
 0x661   :  { %s1328_s20 = sadd.f32 -4.9355016, %s2328_s18  ;;  %s2330_s21 = spop %2329 }
 0x662   :  { %1198 = sst [smem:[#allocation11 + $0x2]] %s1196_s19  ;;  %s1651_s22 = smul.f32 0.5, %s2330_s21 }
 0x663   :  { %1330 = sst [smem:[#allocation10 + $0x2]] %s1328_s20  ;;  %s2332_s23 = spop %2331 }
 0x664   :  { %s1652_s24 = ssub.f32 %s245_s6, %s1651_s22 }
 0x665   :  { %s1784_s25 = sadd.f32 -4.9355016, %s2332_s23 }
 0x666   :  { %1654 = sst [smem:[#allocation11 + $0x3]] %s1652_s24 }
 0x667   :  { %1786 = sst [smem:[#allocation10 + $0x3]] %s1784_s25 }
 0x668   :  { %2687 = shalt.err (!%p2684_p12)
}
 0x669   :  { %s2738_s9 = smov [#allocation10]   ;;  %s2688_s13 = scalar_lea.hbm %s3834_s5, 16 }
 0x66a   :  { %2051 = dma.smem_to_hbm %s2738_s9, 16, %s3833_s4, [#allocation5]  }
 0x66b   :  { %p2689_p13 = scmp.ne.s32.totalorder %s3834_s5, %s2688_s13  ;;  %p2692_p0 = scmp.lt.u32.totalorder %s2688_s13, %s3834_s5 }
 0x66d   :  { %p2694_p1 = pnand %p2692_p0, %p2689_p13 }
 0x66f   :  { %2697 = shalt.err (!%p2694_p1)
}
 0x670   :  { %s2739_s1 = smov [#allocation11]   ;;  %s2740_s4 = smov [#allocation9]  }
 0x671   :  { %2059 = dma.smem_to_hbm %s2739_s1, 16, %s3834_s5, [#allocation12]  }
 0x672   :  { %s2037_s20 = sshll.u32 %s2740_s4, 4  ;;  %s2038_s20 = int_to_ptr.vmem [resolvable:$true] %s2037_s20 }
 0x673   :  { %s2698_s21 = scalar_lea.vmem %s2038_s20, 512  ;;  %p2703_p3 = scmp.lt.s32.totalorder %s2038_s20, %s2038_s20 }
 0x674   :  { %p2699_p2 = scmp.ne.s32.totalorder %s2038_s20, %s2698_s21  ;;  %p2704_p4 = scmp.lt.s32.totalorder %s2698_s21, %s2698_s21 }
 0x676   :  { %p2705_p5 = por %p2704_p4, %p2703_p3 }
 0x678   :  { %p2706_p6 = pnand %p2705_p5, %p2699_p2 }
 0x6b0   :  { %v2024_v38 = vpop.xlane.xlu0 %2023 }
 0x6b1   :  { %2600 = vrcp.f32 %v2024_v38 }
 0x6bb   :  { %v2601_v1 = vpop.eup %2600 }
 0x6bc   :  { %v2026_v4 = vmul.f32 %v2601_v1, %v2024_v38 }
 0x6be   :  { %v2027_v22 = vsub.f32 2.0, %v2026_v4 }
 0x6c0   :  { %v2028_v29 = vmul.f32 %v2601_v1, %v2027_v22 }
 0x6c2   :  { %v2029_v11 = vmul.f32 %v3784_v23, %v2028_v29 }
 0x6c4   :  { %2031 = vst [vmem:[#allocation9 + $0x18] sm:$0xff] %v2029_v11 }
 0x6c5   :  { %2709 = shalt.err (!%p2706_p6)
}
 0x6c6   :  { %s2710_s23 = scalar_lea.hbm %s3832_s3, 512 }
 0x6c7   :  { %p2711_p7 = scmp.ne.s32.totalorder %s3832_s3, %s2710_s23  ;;  %p2714_p8 = scmp.lt.u32.totalorder %s2710_s23, %s3832_s3 }
 0x6c9   :  { %p2716_p9 = pnand %p2714_p8, %p2711_p7 }
 0x6cb   :  { %2719 = shalt.err (!%p2716_p9)
}
 0x6cc   :  { %2043 = dma.vmem_to_hbm [thread:$0]  %s2038_s20, 512, %s3832_s3, [#allocation4], %s2731_s28, %s2731_s28, %s2732_s29  }
 0x6cd   :  { %2724 = dma.done.wait [#allocation4], 512  }
 0x6ce   :  { %2725 = vsyncadd [#allocation4], 4294966784 }
 0x6cf   :  { %2726 = dma.done.wait [#allocation5], 16  }
 0x6d0   :  { %2727 = vsyncadd [#allocation5], 4294967280 }
 0x6d1   :  { %2728 = dma.done.wait [#allocation12], 16  }
 0x6d2   :  { %2729 = vsyncadd [#allocation12], 4294967280 }
 0x6d3   :  { %2069 = sfence }
 0x6d4   :  { %2070 = vsyncpa [#allocation3], 1 }
 0x6d5   :  { %2071 = vsyncpa [#allocation7], 1 }
 0x6d6   :  { %2072 = vsyncpa [#allocation4], 1 }
 0x6d7   :  { %2073 = vsyncpa [#allocation5], 1 }
 0x6d8   :  { %2074 = vsyncpa [#allocation12], 1 }

</bundles_post_ra>
